<compile_context>
chip_gen: v6e
topology: v6e:2x2x1
jax: 0.10.0
libtpu: 0.0.40
codegen_flags: <defaults>
</compile_context>

<pallas_src>
import functools

import numpy as np

import jax
import jax.numpy as jnp
from jax.experimental import pallas as pl
from jax.experimental.pallas import tpu as pltpu

# ---- model constants (fixed by the PyTorch module) -------------------------
C_OUT = 16            # conv output channels
K = 7                 # conv kernel size
IH = IW = 28          # input spatial size required by Linear(16*11*11, 256)
OH = OW = 22          # 28 - 7 + 1
PH = PW = 11          # after 2x2 max pool
NUM_CLASSES = 10
HIDDEN = 256
FLAT = C_OUT * PH * PW            # 1936

# ---- kernel layout constants ------------------------------------------------
KIW = K * IW                      # 196  real conv-contraction length
KIW_PAD = 256                     # lane-padded contraction length
NCOL_HALF = 256                   # padded conv columns per ow-parity (176 real)
NCOL = 2 * NCOL_HALF              # 512
FC1_K = PH * NCOL_HALF            # 2816 fused fc1 contraction length
OUT_PAD = 128                     # lane-dense padded logits width


# ---------------------------------------------------------------------------
# Fused forward kernel (one grid step = TB samples)
# ---------------------------------------------------------------------------
def model3_fused_kernel(lhs_ref, m_ref, bc_ref, w1_ref, b1_ref, w2_ref, b2_ref,
                        o_ref, fc_ref, *, tb):
    half = PH * tb

    # --- conv: single K=256 (196 real) Toeplitz matmul over all rows ---------
    # lhs_ref: (1, 2*11*tb, 256) bf16 ; m_ref: (256, 512) bf16
    cv = jnp.dot(lhs_ref[0], m_ref[...], preferred_element_type=jnp.float32)

    # --- 2x2 pool over width: the two 256-wide halves are ow parity 0 / 1 ----
    wp = jnp.maximum(cv[:, :NCOL_HALF], cv[:, NCOL_HALF:])          # (2*half, 256)

    # --- 2x2 pool over height: even-oh rows vs odd-oh rows (pure VPU max) ----
    feat = jnp.maximum(wp[:half, :], wp[half:, :])                  # (11*tb, 256)
    feat = jnp.maximum(feat + bc_ref[...], 0.0).astype(jnp.bfloat16)

    # --- lane-concat the 11 ph slabs into a (tb, 2816) block (fc1 LHS) -------
    for ph in range(PH):
        fc_ref[:, ph * NCOL_HALF:(ph + 1) * NCOL_HALF] = feat[ph * tb:(ph + 1) * tb, :]

    # --- fc1 (+ReLU): ONE long-K matmul (CHW flatten folded into w1) ---------
    h = jnp.dot(fc_ref[...], w1_ref[...], preferred_element_type=jnp.float32)
    h = jnp.maximum(h + b1_ref[...], 0.0).astype(jnp.bfloat16)      # (tb, 256)

    # --- fc2 into a lane-dense padded (tb, 128) logits block -----------------
    o_ref[...] = jnp.dot(h, w2_ref[...],
                         preferred_element_type=jnp.float32) + b2_ref[...]


# ---------------------------------------------------------------------------
# One-time parameter re-layout (run once, outside the forward)
# ---------------------------------------------------------------------------
def prepare_params(params):
    conv_w, conv_b, fc1_w, fc1_b, fc2_w, fc2_b = params
    f32, bf16 = jnp.float32, jnp.bfloat16

    # Toeplitz conv matrix, fused over the 7 tap rows:
    # M[di*28 + j, s*256 + c*11 + pw] = conv_w[c, 0, di, j - (2*pw + s)]
    di_i, c_i, dj_i, pw_i, s_i = np.meshgrid(
        np.arange(K), np.arange(C_OUT), np.arange(K),
        np.arange(PW), np.arange(2), indexing="ij")
    j_i = 2 * pw_i + s_i + dj_i                      # input column, in [0, 28)
    row_i = di_i * IW + j_i                          # contraction row, in [0, 196)
    col_i = s_i * NCOL_HALF + c_i * PW + pw_i        # output column, in [0, 512)
    vals = conv_w.astype(f32)[c_i, 0, di_i, dj_i]
    m = (jnp.zeros((KIW_PAD, NCOL), f32)
         .at[row_i, col_i].set(vals).astype(bf16))

    # conv bias in the (c*11 + pw) column layout, zero padded to 256
    bc = (jnp.zeros((1, NCOL_HALF), f32)
          .at[0, :C_OUT * PW].set(jnp.repeat(conv_b.astype(f32), PW)))

    # fc1 weight: torch CHW flatten -> fused (ph*256 + c*11 + pw, n) rows
    w1 = fc1_w.astype(f32).reshape(HIDDEN, C_OUT, PH, PW).transpose(2, 1, 3, 0)
    w1 = w1.reshape(PH, C_OUT * PW, HIDDEN)
    w1 = jnp.pad(w1, ((0, 0), (0, NCOL_HALF - C_OUT * PW), (0, 0)))
    w1 = w1.reshape(FC1_K, HIDDEN).astype(bf16)               # (2816, 256)
    b1 = fc1_b.astype(f32).reshape(1, HIDDEN)

    # fc2 padded to a lane-dense 128-wide output
    w2 = jnp.pad(fc2_w.astype(f32).T,
                 ((0, 0), (0, OUT_PAD - NUM_CLASSES))).astype(bf16)
    b2 = jnp.pad(fc2_b.astype(f32), (0, OUT_PAD - NUM_CLASSES)).reshape(1, OUT_PAD)

    return (m, bc, w1, b1, w2, b2)


# ---------------------------------------------------------------------------
# Batch-tile size: large for real batches, >=2 grid steps when possible
# ---------------------------------------------------------------------------
def _choose_tb(batch):
    bp = -(-batch // 8) * 8                  # round batch up to multiple of 8
    if bp <= 8:
        return 8
    if bp <= 256:
        return min(128, -(-(bp // 2) // 8) * 8)   # aim for nb == 2 (both v7x TCs)
    return 128


# ---------------------------------------------------------------------------
# Forward wrapper (single fused pallas_call)
# ---------------------------------------------------------------------------
@jax.jit
def model3_forward(x, prep):
    m, bc, w1, b1, w2, b2 = prep
    B = x.shape[0]
    TB = _choose_tb(B)
    nb = -(-B // TB)
    B_pad = nb * TB

    x2 = x[:, 0].astype(jnp.float32)                            # (B, 28, 28)
    if B_pad != B:
        x2 = jnp.pad(x2, ((0, B_pad - B), (0, 0), (0, 0)))

    # im2row over VALID conv output rows: patches[b, oh, di*28 + j] = x[b, oh+di, j]
    oh_idx = jnp.arange(OH)[:, None] + jnp.arange(K)[None, :]   # (22, 7)
    patches = x2[:, oh_idx, :].reshape(B_pad, OH, KIW)          # (B_pad, 22, 196)

    def tile_rows(p):   # (B_pad, 11, 196) -> (nb, 11*TB, 196), row = ph*TB + b
        return (p.reshape(nb, TB, PH, KIW).transpose(0, 2, 1, 3)
                 .reshape(nb, PH * TB, KIW))

    # rows [0:11*TB) = even output rows, rows [11*TB:2*11*TB) = odd output rows
    lhs = jnp.concatenate([tile_rows(patches[:, 0::2, :]),
                           tile_rows(patches[:, 1::2, :])], axis=1)
    lhs = jnp.pad(lhs, ((0, 0), (0, 0), (0, KIW_PAD - KIW))).astype(jnp.bfloat16)

    rows = 2 * PH * TB
    kernel = functools.partial(model3_fused_kernel, tb=TB)

    out = pl.pallas_call(
        kernel,
        out_shape=jax.ShapeDtypeStruct((B_pad, OUT_PAD), jnp.float32),
        grid_spec=pltpu.PrefetchScalarGridSpec(
            num_scalar_prefetch=0,
            grid=(nb,),
            in_specs=[
                pl.BlockSpec((1, rows, KIW_PAD), lambda i: (i, 0, 0)),   # im2row LHS
                pl.BlockSpec((KIW_PAD, NCOL), lambda i: (0, 0)),         # conv Toeplitz
                pl.BlockSpec((1, NCOL_HALF), lambda i: (0, 0)),          # conv bias
                pl.BlockSpec((FC1_K, HIDDEN), lambda i: (0, 0)),         # fused fc1 weight
                pl.BlockSpec((1, HIDDEN), lambda i: (0, 0)),             # fc1 bias
                pl.BlockSpec((HIDDEN, OUT_PAD), lambda i: (0, 0)),       # fc2 weight
                pl.BlockSpec((1, OUT_PAD), lambda i: (0, 0)),            # fc2 bias
            ],
            out_specs=pl.BlockSpec((TB, OUT_PAD), lambda i: (i, 0)),
            scratch_shapes=[pltpu.VMEM((TB, FC1_K), jnp.bfloat16)],      # fc1 LHS
        ),
        compiler_params=pltpu.CompilerParams(
            dimension_semantics=("parallel",)),
    )(lhs, m, bc, w1, b1, w2, b2)

    return out[:B, :NUM_CLASSES]


# ---------------------------------------------------------------------------
# Pure-JAX reference (mirrors the PyTorch module exactly, f32)
# ---------------------------------------------------------------------------
def reference_forward(x, params):
    conv_w, conv_b, fc1_w, fc1_b, fc2_w, fc2_b = params
    B = x.shape[0]
    y = jax.lax.conv_general_dilated(
        x, conv_w, window_strides=(1, 1), padding="VALID",
        dimension_numbers=("NCHW", "OIHW", "NCHW"))
    y = jax.nn.relu(y + conv_b.reshape(1, C_OUT, 1, 1))
    y = y.reshape(B, C_OUT, PH, 2, PW, 2).max(axis=(3, 5))     # MaxPool2d(2)
    y = y.reshape(B, FLAT)                                     # torch.flatten (CHW)
    y = jax.nn.relu(y @ fc1_w.T + fc1_b)
    return y @ fc2_w.T + fc2_b


def init_params(key):
    k1, k2, k3, k4, k5, k6 = jax.random.split(key, 6)
    conv_w = jax.random.normal(k1, (C_OUT, 1, K, K), jnp.float32) * 0.10
    conv_b = jax.random.normal(k2, (C_OUT,), jnp.float32) * 0.10
    fc1_w = jax.random.normal(k3, (HIDDEN, FLAT), jnp.float32) * 0.02
    fc1_b = jax.random.normal(k4, (HIDDEN,), jnp.float32) * 0.02
    fc2_w = jax.random.normal(k5, (NUM_CLASSES, HIDDEN), jnp.float32) * 0.05
    fc2_b = jax.random.normal(k6, (NUM_CLASSES,), jnp.float32) * 0.05
    return (conv_w, conv_b, fc1_w, fc1_b, fc2_w, fc2_b)


if __name__ == "__main__":
    root = jax.random.PRNGKey(0)
    kx, kx2, kp = jax.random.split(root, 3)
    params = init_params(kp)
    prep = prepare_params(params)     # one-time weight re-layout (hoisted)

    # Input spatial size must be 28x28 (classifier expects 16*11*11 features).
    # Small primary test (batch=2) ...
    x = jax.random.normal(kx, (2, 1, IH, IW), jnp.float32)
    out = jax.block_until_ready(model3_forward(x, prep))
    assert out.shape == (2, NUM_CLASSES)
    ref = reference_forward(x, params)
    assert jnp.allclose(out, ref, rtol=2e-2, atol=2e-2), (
        f"mismatch(B=2): max abs diff {jnp.max(jnp.abs(out - ref))}")

    # ... plus a multi-tile test (nb=2) to exercise the grid/parallel path.
    xb = jax.random.normal(kx2, (32, 1, IH, IW), jnp.float32)
    outb = jax.block_until_ready(model3_forward(xb, prep))
    refb = reference_forward(xb, params)
    assert jnp.allclose(outb, refb, rtol=2e-2, atol=2e-2), (
        f"mismatch(B=32): max abs diff {jnp.max(jnp.abs(outb - refb))}")

    print("KERNEL_OK")
</pallas_src>

<mosaic_0001>
module attributes {stable_mosaic.version = 11 : i64} {
  func.func @model3_fused_kernel(%arg0: i32, %arg1: memref<1x176x256xbf16, #tpu.memory_space<vmem>>, %arg2: memref<256x512xbf16, #tpu.memory_space<vmem>>, %arg3: memref<1x256xf32, #tpu.memory_space<vmem>>, %arg4: memref<2816x256xbf16, #tpu.memory_space<vmem>>, %arg5: memref<1x256xf32, #tpu.memory_space<vmem>>, %arg6: memref<256x128xbf16, #tpu.memory_space<vmem>>, %arg7: memref<1x128xf32, #tpu.memory_space<vmem>>, %arg8: memref<8x128xf32, #tpu.memory_space<vmem>>, %arg9: memref<8x2816xbf16, #tpu.memory_space<vmem>>) attributes {dimension_semantics = [#tpu.dimension_semantics<parallel>], iteration_bounds = array<i64: 1>, scalar_prefetch = 0 : i64, scratch_operands = 1 : i64, tpu.core_type = #tpu.core_type<tc>, window_params = [{transform_indices = @transform_0, window_bounds = array<i64: 1, 176, 256>}, {pipeline_mode = #tpu.pipeline_mode<synchronous>, transform_indices = @transform_1, window_bounds = array<i64: 256, 512>}, {pipeline_mode = #tpu.pipeline_mode<synchronous>, transform_indices = @transform_2, window_bounds = array<i64: 1, 256>}, {pipeline_mode = #tpu.pipeline_mode<synchronous>, transform_indices = @transform_3, window_bounds = array<i64: 2816, 256>}, {pipeline_mode = #tpu.pipeline_mode<synchronous>, transform_indices = @transform_4, window_bounds = array<i64: 1, 256>}, {pipeline_mode = #tpu.pipeline_mode<synchronous>, transform_indices = @transform_5, window_bounds = array<i64: 256, 128>}, {pipeline_mode = #tpu.pipeline_mode<synchronous>, transform_indices = @transform_6, window_bounds = array<i64: 1, 128>}, {transform_indices = @transform_7, window_bounds = array<i64: 8, 128>}]} {
    %c0 = arith.constant 0 : index
    %c0_0 = arith.constant 0 : index
    %c0_1 = arith.constant 0 : index
    %0 = vector.load %arg1[%c0, %c0_0, %c0_1] : memref<1x176x256xbf16, #tpu.memory_space<vmem>>, vector<1x176x256xbf16>
    %1 = vector.shape_cast %0 : vector<1x176x256xbf16> to vector<176x256xbf16>
    %c0_2 = arith.constant 0 : index
    %c0_3 = arith.constant 0 : index
    %2 = vector.load %arg2[%c0_2, %c0_3] : memref<256x512xbf16, #tpu.memory_space<vmem>>, vector<256x512xbf16>
    %cst = arith.constant dense<0.000000e+00> : vector<176x512xf32>
    %3 = tpu.matmul %1, %2, %cst {dimension_numbers = #tpu.dot_dimension_numbers<[1], [0], [0], [1], [0, 0, 1, 1], [], []>} : vector<176x256xbf16>, vector<256x512xbf16>, vector<176x512xf32> -> vector<176x512xf32>
    %4 = vector.extract_strided_slice %3 {offsets = [0, 0], sizes = [176, 256], strides = [1, 1]} : vector<176x512xf32> to vector<176x256xf32>
    %5 = vector.extract_strided_slice %3 {offsets = [0, 256], sizes = [176, 256], strides = [1, 1]} : vector<176x512xf32> to vector<176x256xf32>
    %6 = arith.maximumf %4, %5 : vector<176x256xf32>
    %7 = vector.extract_strided_slice %6 {offsets = [0, 0], sizes = [88, 256], strides = [1, 1]} : vector<176x256xf32> to vector<88x256xf32>
    %8 = vector.extract_strided_slice %6 {offsets = [88, 0], sizes = [88, 256], strides = [1, 1]} : vector<176x256xf32> to vector<88x256xf32>
    %9 = arith.maximumf %7, %8 : vector<88x256xf32>
    %c0_4 = arith.constant 0 : index
    %c0_5 = arith.constant 0 : index
    %10 = vector.load %arg3[%c0_4, %c0_5] : memref<1x256xf32, #tpu.memory_space<vmem>>, vector<1x256xf32>
    %11 = vector.broadcast %10 : vector<1x256xf32> to vector<88x256xf32>
    %12 = arith.addf %9, %11 : vector<88x256xf32>
    %cst_6 = arith.constant 0.000000e+00 : f32
    %13 = vector.broadcast %cst_6 : f32 to vector<88x256xf32>
    %14 = arith.maximumf %12, %13 : vector<88x256xf32>
    %15 = arith.truncf %14 : vector<88x256xf32> to vector<88x256xbf16>
    %16 = vector.extract_strided_slice %15 {offsets = [0, 0], sizes = [8, 256], strides = [1, 1]} : vector<88x256xbf16> to vector<8x256xbf16>
    %c0_7 = arith.constant 0 : index
    %c0_8 = arith.constant 0 : index
    %17 = vector.load %arg9[%c0_7, %c0_8] : memref<8x2816xbf16, #tpu.memory_space<vmem>>, vector<8x256xbf16>
    tpu.vector_store %arg9[%c0_7, %c0_8], %16 {strides = array<i32>} : memref<8x2816xbf16, #tpu.memory_space<vmem>>, vector<8x256xbf16>,
    %18 = vector.extract_strided_slice %15 {offsets = [8, 0], sizes = [8, 256], strides = [1, 1]} : vector<88x256xbf16> to vector<8x256xbf16>
    %c0_9 = arith.constant 0 : index
    %c256 = arith.constant 256 : index
    %19 = vector.load %arg9[%c0_9, %c256] : memref<8x2816xbf16, #tpu.memory_space<vmem>>, vector<8x256xbf16>
    tpu.vector_store %arg9[%c0_9, %c256], %18 {strides = array<i32>} : memref<8x2816xbf16, #tpu.memory_space<vmem>>, vector<8x256xbf16>,
    %20 = vector.extract_strided_slice %15 {offsets = [16, 0], sizes = [8, 256], strides = [1, 1]} : vector<88x256xbf16> to vector<8x256xbf16>
    %c0_10 = arith.constant 0 : index
    %c512 = arith.constant 512 : index
    %21 = vector.load %arg9[%c0_10, %c512] : memref<8x2816xbf16, #tpu.memory_space<vmem>>, vector<8x256xbf16>
    tpu.vector_store %arg9[%c0_10, %c512], %20 {strides = array<i32>} : memref<8x2816xbf16, #tpu.memory_space<vmem>>, vector<8x256xbf16>,
    %22 = vector.extract_strided_slice %15 {offsets = [24, 0], sizes = [8, 256], strides = [1, 1]} : vector<88x256xbf16> to vector<8x256xbf16>
    %c0_11 = arith.constant 0 : index
    %c768 = arith.constant 768 : index
    %23 = vector.load %arg9[%c0_11, %c768] : memref<8x2816xbf16, #tpu.memory_space<vmem>>, vector<8x256xbf16>
    tpu.vector_store %arg9[%c0_11, %c768], %22 {strides = array<i32>} : memref<8x2816xbf16, #tpu.memory_space<vmem>>, vector<8x256xbf16>,
    %24 = vector.extract_strided_slice %15 {offsets = [32, 0], sizes = [8, 256], strides = [1, 1]} : vector<88x256xbf16> to vector<8x256xbf16>
    %c0_12 = arith.constant 0 : index
    %c1024 = arith.constant 1024 : index
    %25 = vector.load %arg9[%c0_12, %c1024] : memref<8x2816xbf16, #tpu.memory_space<vmem>>, vector<8x256xbf16>
    tpu.vector_store %arg9[%c0_12, %c1024], %24 {strides = array<i32>} : memref<8x2816xbf16, #tpu.memory_space<vmem>>, vector<8x256xbf16>,
    %26 = vector.extract_strided_slice %15 {offsets = [40, 0], sizes = [8, 256], strides = [1, 1]} : vector<88x256xbf16> to vector<8x256xbf16>
    %c0_13 = arith.constant 0 : index
    %c1280 = arith.constant 1280 : index
    %27 = vector.load %arg9[%c0_13, %c1280] : memref<8x2816xbf16, #tpu.memory_space<vmem>>, vector<8x256xbf16>
    tpu.vector_store %arg9[%c0_13, %c1280], %26 {strides = array<i32>} : memref<8x2816xbf16, #tpu.memory_space<vmem>>, vector<8x256xbf16>,
    %28 = vector.extract_strided_slice %15 {offsets = [48, 0], sizes = [8, 256], strides = [1, 1]} : vector<88x256xbf16> to vector<8x256xbf16>
    %c0_14 = arith.constant 0 : index
    %c1536 = arith.constant 1536 : index
    %29 = vector.load %arg9[%c0_14, %c1536] : memref<8x2816xbf16, #tpu.memory_space<vmem>>, vector<8x256xbf16>
    tpu.vector_store %arg9[%c0_14, %c1536], %28 {strides = array<i32>} : memref<8x2816xbf16, #tpu.memory_space<vmem>>, vector<8x256xbf16>,
    %30 = vector.extract_strided_slice %15 {offsets = [56, 0], sizes = [8, 256], strides = [1, 1]} : vector<88x256xbf16> to vector<8x256xbf16>
    %c0_15 = arith.constant 0 : index
    %c1792 = arith.constant 1792 : index
    %31 = vector.load %arg9[%c0_15, %c1792] : memref<8x2816xbf16, #tpu.memory_space<vmem>>, vector<8x256xbf16>
    tpu.vector_store %arg9[%c0_15, %c1792], %30 {strides = array<i32>} : memref<8x2816xbf16, #tpu.memory_space<vmem>>, vector<8x256xbf16>,
    %32 = vector.extract_strided_slice %15 {offsets = [64, 0], sizes = [8, 256], strides = [1, 1]} : vector<88x256xbf16> to vector<8x256xbf16>
    %c0_16 = arith.constant 0 : index
    %c2048 = arith.constant 2048 : index
    %33 = vector.load %arg9[%c0_16, %c2048] : memref<8x2816xbf16, #tpu.memory_space<vmem>>, vector<8x256xbf16>
    tpu.vector_store %arg9[%c0_16, %c2048], %32 {strides = array<i32>} : memref<8x2816xbf16, #tpu.memory_space<vmem>>, vector<8x256xbf16>,
    %34 = vector.extract_strided_slice %15 {offsets = [72, 0], sizes = [8, 256], strides = [1, 1]} : vector<88x256xbf16> to vector<8x256xbf16>
    %c0_17 = arith.constant 0 : index
    %c2304 = arith.constant 2304 : index
    %35 = vector.load %arg9[%c0_17, %c2304] : memref<8x2816xbf16, #tpu.memory_space<vmem>>, vector<8x256xbf16>
    tpu.vector_store %arg9[%c0_17, %c2304], %34 {strides = array<i32>} : memref<8x2816xbf16, #tpu.memory_space<vmem>>, vector<8x256xbf16>,
    %36 = vector.extract_strided_slice %15 {offsets = [80, 0], sizes = [8, 256], strides = [1, 1]} : vector<88x256xbf16> to vector<8x256xbf16>
    %c0_18 = arith.constant 0 : index
    %c2560 = arith.constant 2560 : index
    %37 = vector.load %arg9[%c0_18, %c2560] : memref<8x2816xbf16, #tpu.memory_space<vmem>>, vector<8x256xbf16>
    tpu.vector_store %arg9[%c0_18, %c2560], %36 {strides = array<i32>} : memref<8x2816xbf16, #tpu.memory_space<vmem>>, vector<8x256xbf16>,
    %c0_19 = arith.constant 0 : index
    %c0_20 = arith.constant 0 : index
    %38 = vector.load %arg9[%c0_19, %c0_20] : memref<8x2816xbf16, #tpu.memory_space<vmem>>, vector<8x2816xbf16>
    %c0_21 = arith.constant 0 : index
    %c0_22 = arith.constant 0 : index
    %39 = vector.load %arg4[%c0_21, %c0_22] : memref<2816x256xbf16, #tpu.memory_space<vmem>>, vector<2816x256xbf16>
    %cst_23 = arith.constant dense<0.000000e+00> : vector<8x256xf32>
    %40 = tpu.matmul %38, %39, %cst_23 {dimension_numbers = #tpu.dot_dimension_numbers<[1], [0], [0], [1], [0, 0, 1, 1], [], []>} : vector<8x2816xbf16>, vector<2816x256xbf16>, vector<8x256xf32> -> vector<8x256xf32>
    %c0_24 = arith.constant 0 : index
    %c0_25 = arith.constant 0 : index
    %41 = vector.load %arg5[%c0_24, %c0_25] : memref<1x256xf32, #tpu.memory_space<vmem>>, vector<1x256xf32>
    %42 = vector.broadcast %41 : vector<1x256xf32> to vector<8x256xf32>
    %43 = arith.addf %40, %42 : vector<8x256xf32>
    %cst_26 = arith.constant 0.000000e+00 : f32
    %44 = vector.broadcast %cst_26 : f32 to vector<8x256xf32>
    %45 = arith.maximumf %43, %44 : vector<8x256xf32>
    %46 = arith.truncf %45 : vector<8x256xf32> to vector<8x256xbf16>
    %c0_27 = arith.constant 0 : index
    %c0_28 = arith.constant 0 : index
    %47 = vector.load %arg6[%c0_27, %c0_28] : memref<256x128xbf16, #tpu.memory_space<vmem>>, vector<256x128xbf16>
    %cst_29 = arith.constant dense<0.000000e+00> : vector<8x128xf32>
    %48 = tpu.matmul %46, %47, %cst_29 {dimension_numbers = #tpu.dot_dimension_numbers<[1], [0], [0], [1], [0, 0, 1, 1], [], []>} : vector<8x256xbf16>, vector<256x128xbf16>, vector<8x128xf32> -> vector<8x128xf32>
    %c0_30 = arith.constant 0 : index
    %c0_31 = arith.constant 0 : index
    %49 = vector.load %arg7[%c0_30, %c0_31] : memref<1x128xf32, #tpu.memory_space<vmem>>, vector<1x128xf32>
    %50 = vector.broadcast %49 : vector<1x128xf32> to vector<8x128xf32>
    %51 = arith.addf %48, %50 : vector<8x128xf32>
    %c0_32 = arith.constant 0 : index
    %c0_33 = arith.constant 0 : index
    %52 = vector.load %arg8[%c0_32, %c0_33] : memref<8x128xf32, #tpu.memory_space<vmem>>, vector<8x128xf32>
    tpu.vector_store %arg8[%c0_32, %c0_33], %51 {strides = array<i32>} : memref<8x128xf32, #tpu.memory_space<vmem>>, vector<8x128xf32>,
    return
  }
  func.func @transform_0(%arg0: i32) -> (i32, i32, i32) {
    %c0_i32 = arith.constant 0 : i32
    %c0_i32_0 = arith.constant 0 : i32
    %c0_i32_1 = arith.constant 0 : i32
    return %arg0, %c0_i32, %c0_i32_0 : i32, i32, i32
  }
  func.func @transform_1(%arg0: i32) -> (i32, i32) {
    %c0_i32 = arith.constant 0 : i32
    %c0_i32_0 = arith.constant 0 : i32
    %c0_i32_1 = arith.constant 0 : i32
    return %c0_i32, %c0_i32_0 : i32, i32
  }
  func.func @transform_2(%arg0: i32) -> (i32, i32) {
    %c0_i32 = arith.constant 0 : i32
    %c0_i32_0 = arith.constant 0 : i32
    %c0_i32_1 = arith.constant 0 : i32
    return %c0_i32, %c0_i32_0 : i32, i32
  }
  func.func @transform_3(%arg0: i32) -> (i32, i32) {
    %c0_i32 = arith.constant 0 : i32
    %c0_i32_0 = arith.constant 0 : i32
    %c0_i32_1 = arith.constant 0 : i32
    return %c0_i32, %c0_i32_0 : i32, i32
  }
  func.func @transform_4(%arg0: i32) -> (i32, i32) {
    %c0_i32 = arith.constant 0 : i32
    %c0_i32_0 = arith.constant 0 : i32
    %c0_i32_1 = arith.constant 0 : i32
    return %c0_i32, %c0_i32_0 : i32, i32
  }
  func.func @transform_5(%arg0: i32) -> (i32, i32) {
    %c0_i32 = arith.constant 0 : i32
    %c0_i32_0 = arith.constant 0 : i32
    %c0_i32_1 = arith.constant 0 : i32
    return %c0_i32, %c0_i32_0 : i32, i32
  }
  func.func @transform_6(%arg0: i32) -> (i32, i32) {
    %c0_i32 = arith.constant 0 : i32
    %c0_i32_0 = arith.constant 0 : i32
    %c0_i32_1 = arith.constant 0 : i32
    return %c0_i32, %c0_i32_0 : i32, i32
  }
  func.func @transform_7(%arg0: i32) -> (i32, i32) {
    %c0_i32 = arith.constant 0 : i32
    %c0_i32_0 = arith.constant 0 : i32
    return %arg0, %c0_i32 : i32, i32
  }
}

</mosaic_0001>

<bundles_post_ra>
// kernel: model3_forward.1
= control target key start
LH: loop header
LB: loop body
LE: loop exit
PB: predicated region body
PF: predicated region fallthrough
CT: control target
= control target key end

     0   :  { %s6782_s1 = inlined_call_operand.vmem [shape: bf16[256,512], index: 1, kind: input, shape index: {}]   ;;  %s6783_s0 = inlined_call_operand.vmem [shape: bf16[1,176,256], index: 0, kind: input, shape index: {}]   ;;  %s6784_s3 = inlined_call_operand.vmem [shape: bf16[2816,256], index: 3, kind: input, shape index: {}]   ;;  %s6785_s2 = inlined_call_operand.vmem [shape: f32[1,256], index: 2, kind: input, shape index: {}]   ;;  %s6786_s4 = inlined_call_operand.vmem [shape: f32[1,256], index: 4, kind: input, shape index: {}]   ;;  %s6787_s5 = inlined_call_operand.vmem [shape: bf16[256,128], index: 5, kind: input, shape index: {}]   ;;  %s6788_s6 = inlined_call_operand.vmem [shape: f32[1,128], index: 6, kind: input, shape index: {}]   ;;  %s6789_s7 = inlined_call_operand.vmem [shape: f32[8,128], index: 7, kind: output, shape index: {}]  }
   0x1   :  { %v4420_v0 = vld [vmem:[%s6782_s1 + $0xe4] ss:$16 sps:$4 sm:$0xff]   ;;  %v4422_v1 = vld [vmem:[%s6782_s1 + $0xec] ss:$16 sps:$4 sm:$0xff]   ;;  %v4424_v2 = vld [vmem:[%s6782_s1 + $0xe0] ss:$16 sps:$4 sm:$0xff]  }
   0x2   :  { %543 = vmatprep.subr.bf16.mxu0 %v4420_v0  ;;  %v4425_v3 = vld [vmem:[%s6782_s1 + $0xe8] ss:$16 sps:$4 sm:$0xff]   ;;  %686 = vmatprep.subr.bf16.mxu1 %v4422_v1  ;;  %v4426_v4 = vld [vmem:[%s6782_s1 + $0xc4] ss:$16 sps:$4 sm:$0xff]   ;;  %v4428_v5 = vld [vmem:[%s6782_s1 + $0xcc] ss:$16 sps:$4 sm:$0xff]  }
   0x3   :  { %544 = vmatpush1.bf16.msra.mxu0 %v4424_v2  ;;  %687 = vmatpush1.bf16.msra.mxu1 %v4425_v3  ;;  %v4430_v6 = vld [vmem:[%s6782_s1 + $0xc0] ss:$16 sps:$4 sm:$0xff]   ;;  %v4431_v7 = vld [vmem:[%s6782_s1 + $0xc8] ss:$16 sps:$4 sm:$0xff]   ;;  %v4432_v8 = vld [vmem:[%s6782_s1 + $0xa4] ss:$16 sps:$4 sm:$0xff]  }
   0x4   :  { %545 = vmatprep.subr.bf16.mxu0 %v4426_v4  ;;  %688 = vmatprep.subr.bf16.mxu1 %v4428_v5  ;;  %v4434_v9 = vld [vmem:[%s6782_s1 + $0xac] ss:$16 sps:$4 sm:$0xff]   ;;  %v4436_v10 = vld [vmem:[%s6782_s1 + $0xa0] ss:$16 sps:$4 sm:$0xff]   ;;  %v4437_v11 = vld [vmem:[%s6782_s1 + $0xa8] ss:$16 sps:$4 sm:$0xff]  }
   0x5   :  { %v4438_v12 = vld [vmem:[%s6782_s1 + $0x84] ss:$16 sps:$4 sm:$0xff]   ;;  %v4440_v13 = vld [vmem:[%s6782_s1 + $0x8c] ss:$16 sps:$4 sm:$0xff]   ;;  %v4442_v14 = vld [vmem:[%s6782_s1 + $0x80] ss:$16 sps:$4 sm:$0xff]  }
   0x6   :  { %v4443_v15 = vld [vmem:[%s6782_s1 + $0x88] ss:$16 sps:$4 sm:$0xff]   ;;  %v4444_v16 = vld [vmem:[%s6782_s1 + $0x64] ss:$16 sps:$4 sm:$0xff]   ;;  %v4446_v17 = vld [vmem:[%s6782_s1 + $0x6c] ss:$16 sps:$4 sm:$0xff]  }
   0x7   :  { %546 = vmatpush1.bf16.msra.mxu0 %v4430_v6  ;;  %689 = vmatpush1.bf16.msra.mxu1 %v4431_v7  ;;  %v4448_v18 = vld [vmem:[%s6782_s1 + $0x60] ss:$16 sps:$4 sm:$0xff]   ;;  %v4449_v19 = vld [vmem:[%s6782_s1 + $0x68] ss:$16 sps:$4 sm:$0xff]   ;;  %v4450_v20 = vld [vmem:[%s6782_s1 + $0x44] ss:$16 sps:$4 sm:$0xff]  }
   0x8   :  { %547 = vmatprep.subr.bf16.mxu0 %v4432_v8  ;;  %690 = vmatprep.subr.bf16.mxu1 %v4434_v9  ;;  %v4452_v21 = vld [vmem:[%s6782_s1 + $0x4c] ss:$16 sps:$4 sm:$0xff]   ;;  %v4454_v22 = vld [vmem:[%s6782_s1 + $0x40] ss:$16 sps:$4 sm:$0xff]   ;;  %v4455_v23 = vld [vmem:[%s6782_s1 + $0x48] ss:$16 sps:$4 sm:$0xff]  }
   0x9   :  { %v4456_v24 = vld [vmem:[%s6782_s1 + $0x24] ss:$16 sps:$4 sm:$0xff]   ;;  %v4458_v25 = vld [vmem:[%s6782_s1 + $0x2c] ss:$16 sps:$4 sm:$0xff]   ;;  %v4460_v26 = vld [vmem:[%s6782_s1 + $0x20] ss:$16 sps:$4 sm:$0xff]  }
   0xa   :  { %v4461_v27 = vld [vmem:[%s6782_s1 + $0x28] ss:$16 sps:$4 sm:$0xff]   ;;  %v4462_v28 = vld [vmem:[%s6782_s1 + $0x4] ss:$16 sps:$4 sm:$0xff]   ;;  %v4464_v29 = vld [vmem:[%s6782_s1 + $0xc] ss:$16 sps:$4 sm:$0xff]  }
   0xb   :  { %548 = vmatpush1.bf16.msra.mxu0 %v4436_v10  ;;  %691 = vmatpush1.bf16.msra.mxu1 %v4437_v11  ;;  %v4466_v30 = vld [vmem:[%s6782_s1] ss:$16 sps:$4 sm:$0xff]   ;;  %v4467_v31 = vld [vmem:[%s6782_s1 + $0x8] ss:$16 sps:$4 sm:$0xff]   ;;  %v4468_v32 = vld [vmem:[%s6782_s1 + $0x1e4] ss:$16 sps:$4 sm:$0xff]  }
   0xc   :  { %549 = vmatprep.subr.bf16.mxu0 %v4438_v12  ;;  %692 = vmatprep.subr.bf16.mxu1 %v4440_v13  ;;  %v4470_v33 = vld [vmem:[%s6782_s1 + $0x1ec] ss:$16 sps:$4 sm:$0xff]   ;;  %v4472_v34 = vld [vmem:[%s6782_s1 + $0x1e0] ss:$16 sps:$4 sm:$0xff]   ;;  %v4473_v35 = vld [vmem:[%s6782_s1 + $0x1e8] ss:$16 sps:$4 sm:$0xff]  }
   0xd   :  { %v4474_v36 = vld [vmem:[%s6782_s1 + $0x1c4] ss:$16 sps:$4 sm:$0xff]   ;;  %v4476_v37 = vld [vmem:[%s6782_s1 + $0x1cc] ss:$16 sps:$4 sm:$0xff]   ;;  %v4478_v38 = vld [vmem:[%s6782_s1 + $0x1c0] ss:$16 sps:$4 sm:$0xff]  }
   0xe   :  { %v4479_v39 = vld [vmem:[%s6782_s1 + $0x1c8] ss:$16 sps:$4 sm:$0xff]   ;;  %v4480_v40 = vld [vmem:[%s6782_s1 + $0x1a4] ss:$16 sps:$4 sm:$0xff]   ;;  %v4482_v41 = vld [vmem:[%s6782_s1 + $0x1ac] ss:$16 sps:$4 sm:$0xff]  }
   0xf   :  { %550 = vmatpush1.bf16.msra.mxu0 %v4442_v14  ;;  %693 = vmatpush1.bf16.msra.mxu1 %v4443_v15  ;;  %v4484_v42 = vld [vmem:[%s6782_s1 + $0x1a0] ss:$16 sps:$4 sm:$0xff]   ;;  %v4485_v43 = vld [vmem:[%s6782_s1 + $0x1a8] ss:$16 sps:$4 sm:$0xff]   ;;  %v4486_v44 = vld [vmem:[%s6782_s1 + $0x184] ss:$16 sps:$4 sm:$0xff]  }
  0x10   :  { %551 = vmatprep.subr.bf16.mxu0 %v4444_v16  ;;  %694 = vmatprep.subr.bf16.mxu1 %v4446_v17  ;;  %v4488_v45 = vld [vmem:[%s6782_s1 + $0x18c] ss:$16 sps:$4 sm:$0xff]   ;;  %v4490_v46 = vld [vmem:[%s6782_s1 + $0x180] ss:$16 sps:$4 sm:$0xff]   ;;  %v4491_v47 = vld [vmem:[%s6782_s1 + $0x188] ss:$16 sps:$4 sm:$0xff]  }
  0x11   :  { %v4518_v48 = vld [vmem:[%s6783_s0 + $0x4] ss:$8 sps:$4 sm:$0xff]   ;;  %v4496_v51 = vld [vmem:[%s6782_s1 + $0x160] ss:$16 sps:$4 sm:$0xff]   ;;  %v4497_v52 = vld [vmem:[%s6782_s1 + $0x168] ss:$16 sps:$4 sm:$0xff]  }
  0x12   :  { %v4492_v49 = vld [vmem:[%s6782_s1 + $0x164] ss:$16 sps:$4 sm:$0xff]   ;;  %v4494_v50 = vld [vmem:[%s6782_s1 + $0x16c] ss:$16 sps:$4 sm:$0xff]   ;;  %575 = vmatprep.mubr.bf16.mxu0 %v4518_v48  ;;  %718 = vmatprep.mubr.bf16.mxu1 %v4518_v48  ;;  %v4502_v55 = vld [vmem:[%s6782_s1 + $0x140] ss:$16 sps:$4 sm:$0xff]  }
  0x13   :  { %552 = vmatpush1.bf16.msra.mxu0 %v4448_v18  ;;  %695 = vmatpush1.bf16.msra.mxu1 %v4449_v19  ;;  %v4498_v53 = vld [vmem:[%s6782_s1 + $0x144] ss:$16 sps:$4 sm:$0xff]   ;;  %v4500_v54 = vld [vmem:[%s6782_s1 + $0x14c] ss:$16 sps:$4 sm:$0xff]   ;;  %v4503_v56 = vld [vmem:[%s6782_s1 + $0x148] ss:$16 sps:$4 sm:$0xff]  }
  0x14   :  { %553 = vmatprep.subr.bf16.mxu0 %v4450_v20  ;;  %696 = vmatprep.subr.bf16.mxu1 %v4452_v21  ;;  %v4504_v57 = vld [vmem:[%s6782_s1 + $0x124] ss:$16 sps:$4 sm:$0xff]   ;;  %v4506_v58 = vld [vmem:[%s6782_s1 + $0x12c] ss:$16 sps:$4 sm:$0xff]   ;;  %v4508_v59 = vld [vmem:[%s6782_s1 + $0x120] ss:$16 sps:$4 sm:$0xff]  }
  0x15   :  { %v4509_v60 = vld [vmem:[%s6782_s1 + $0x128] ss:$16 sps:$4 sm:$0xff]   ;;  %v4510_v61 = vld [vmem:[%s6782_s1 + $0x104] ss:$16 sps:$4 sm:$0xff]   ;;  %v4512_v62 = vld [vmem:[%s6782_s1 + $0x10c] ss:$16 sps:$4 sm:$0xff]  }
  0x16   :  { %v4514_v63 = vld [vmem:[%s6782_s1 + $0x100] ss:$16 sps:$4 sm:$0xff]   ;;  %v4515_v0 = vld [vmem:[%s6782_s1 + $0x108] ss:$16 sps:$4 sm:$0xff]   ;;  %v4551_v1 = vld [vmem:[%s6784_s3 + $0x74] ss:$8 sps:$4 sm:$0xff]  }
  0x17   :  { %554 = vmatpush1.bf16.msra.mxu0 %v4454_v22  ;;  %697 = vmatpush1.bf16.msra.mxu1 %v4455_v23  ;;  %v4516_v2 = vld [vmem:[%s6783_s0] ss:$8 sps:$4 sm:$0xff]   ;;  %v4519_v3 = vld [vmem:[%s6783_s0 + $0x14] ss:$8 sps:$4 sm:$0xff]   ;;  %v4549_v4 = vld [vmem:[%s6784_s3 + $0x70] ss:$8 sps:$4 sm:$0xff]  }
  0x18   :  { %555 = vmatprep.subr.bf16.mxu0 %v4456_v24  ;;  %698 = vmatprep.subr.bf16.mxu1 %v4458_v25  ;;  %v4554_v5 = vld [vmem:[%s6784_s3 + $0x64] ss:$8 sps:$4 sm:$0xff]   ;;  %v4567_v6 = vld [vmem:[%s6784_s3 + $0x170] ss:$8 sps:$4 sm:$0xff]   ;;  %v4569_v7 = vld [vmem:[%s6784_s3 + $0x174] ss:$8 sps:$4 sm:$0xff]  }
  0x19   :  { %v4552_v8 = vld [vmem:[%s6784_s3 + $0x60] ss:$8 sps:$4 sm:$0xff]   ;;  %v4557_v9 = vld [vmem:[%s6784_s3 + $0x54] ss:$8 sps:$4 sm:$0xff]   ;;  %v4521_v10 = vld [vmem:[%s6783_s0 + $0x10] ss:$8 sps:$4 sm:$0xff]  }
  0x1a   :  { %v4522_v11 = vld [vmem:[%s6783_s0 + $0x24] ss:$8 sps:$4 sm:$0xff]   ;;  %v4555_v12 = vld [vmem:[%s6784_s3 + $0x50] ss:$8 sps:$4 sm:$0xff]   ;;  %v4558_v14 = vld [vmem:[%s6784_s3 + $0x40] ss:$8 sps:$4 sm:$0xff]  }
  0x1b   :  { %556 = vmatpush1.bf16.msra.mxu0 %v4460_v26  ;;  %699 = vmatpush1.bf16.msra.mxu1 %v4461_v27  ;;  %v4560_v13 = vld [vmem:[%s6784_s3 + $0x44] ss:$8 sps:$4 sm:$0xff]   ;;  %v4563_v15 = vld [vmem:[%s6784_s3 + $0x34] ss:$8 sps:$4 sm:$0xff]   ;;  %v4524_v16 = vld [vmem:[%s6783_s0 + $0x20] ss:$8 sps:$4 sm:$0xff]  }
  0x1c   :  { %557 = vmatprep.subr.bf16.mxu0 %v4462_v28  ;;  %700 = vmatprep.subr.bf16.mxu1 %v4464_v29  ;;  %v4525_v17 = vld [vmem:[%s6783_s0 + $0x34] ss:$8 sps:$4 sm:$0xff]   ;;  %v4561_v18 = vld [vmem:[%s6784_s3 + $0x30] ss:$8 sps:$4 sm:$0xff]   ;;  %v4566_v19 = vld [vmem:[%s6784_s3 + $0x24] ss:$8 sps:$4 sm:$0xff]  }
  0x1d   :  { %v4564_v20 = vld [vmem:[%s6784_s3 + $0x20] ss:$8 sps:$4 sm:$0xff]   ;;  %v4527_v21 = vld [vmem:[%s6783_s0 + $0x30] ss:$8 sps:$4 sm:$0xff]   ;;  %v4528_v22 = vld [vmem:[%s6783_s0 + $0x44] ss:$8 sps:$4 sm:$0xff]  }
  0x1e   :  { %v4530_v23 = vld [vmem:[%s6783_s0 + $0x40] ss:$8 sps:$4 sm:$0xff]   ;;  %v4531_v24 = vld [vmem:[%s6783_s0 + $0x54] ss:$8 sps:$4 sm:$0xff]   ;;  %v4533_v25 = vld [vmem:[%s6783_s0 + $0x50] ss:$8 sps:$4 sm:$0xff]  }
  0x1f   :  { %558 = vmatpush1.bf16.msra.mxu0 %v4466_v30  ;;  %701 = vmatpush1.bf16.msra.mxu1 %v4467_v31  ;;  %v4534_v26 = vld [vmem:[%s6783_s0 + $0x64] ss:$8 sps:$4 sm:$0xff]   ;;  %v4536_v27 = vld [vmem:[%s6783_s0 + $0x60] ss:$8 sps:$4 sm:$0xff]   ;;  %v4537_v28 = vld [vmem:[%s6783_s0 + $0x74] ss:$8 sps:$4 sm:$0xff]  }
  0x20   :  { %559 = vmatprep.subr.bf16.mxu0 %v4468_v32  ;;  %702 = vmatprep.subr.bf16.mxu1 %v4470_v33  ;;  %v4539_v29 = vld [vmem:[%s6783_s0 + $0x70] ss:$8 sps:$4 sm:$0xff]   ;;  %v4540_v30 = vld [vmem:[%s6783_s0 + $0x84] ss:$8 sps:$4 sm:$0xff]   ;;  %v4542_v31 = vld [vmem:[%s6783_s0 + $0x80] ss:$8 sps:$4 sm:$0xff]  }
  0x21   :  { %v4543_v32 = vld [vmem:[%s6783_s0 + $0x94] ss:$8 sps:$4 sm:$0xff]   ;;  %v4572_v33 = vld [vmem:[%s6784_s3 + $0x164] ss:$8 sps:$4 sm:$0xff]   ;;  %v4585_v48 = vld [vmem:[%s6784_s3 + $0xf0] ss:$8 sps:$4 sm:$0xff]  }
  0x23   :  { %560 = vmatpush2.bf16.msra.mxu0 %v4472_v34  ;;  %703 = vmatpush2.bf16.msra.mxu1 %v4473_v35  ;;  %v4570_v34 = vld [vmem:[%s6784_s3 + $0x160] ss:$8 sps:$4 sm:$0xff]   ;;  %v4545_v35 = vld [vmem:[%s6783_s0 + $0x90] ss:$8 sps:$4 sm:$0xff]  }
  0x24   :  { %561 = vmatprep.subr.bf16.mxu0 %v4474_v36  ;;  %704 = vmatprep.subr.bf16.mxu1 %v4476_v37  ;;  %v4546_v36 = vld [vmem:[%s6783_s0 + $0xa4] ss:$8 sps:$4 sm:$0xff]   ;;  %v4573_v37 = vld [vmem:[%s6784_s3 + $0x10] ss:$8 sps:$4 sm:$0xff]  }
  0x27   :  { %562 = vmatpush2.bf16.msra.mxu0 %v4478_v38  ;;  %705 = vmatpush2.bf16.msra.mxu1 %v4479_v39  ;;  %v4575_v38 = vld [vmem:[%s6784_s3 + $0x14] ss:$8 sps:$4 sm:$0xff]  }
  0x28   :  { %563 = vmatprep.subr.bf16.mxu0 %v4480_v40  ;;  %706 = vmatprep.subr.bf16.mxu1 %v4482_v41  ;;  %v4578_v39 = vld [vmem:[%s6784_s3 + $0x154] ss:$8 sps:$4 sm:$0xff]   ;;  %v4576_v40 = vld [vmem:[%s6784_s3 + $0x150] ss:$8 sps:$4 sm:$0xff]   ;;  %v4584_v41 = vld [vmem:[%s6784_s3 + $0x144] ss:$8 sps:$4 sm:$0xff]  }
  0x2b   :  { %564 = vmatpush2.bf16.msra.mxu0 %v4484_v42  ;;  %707 = vmatpush2.bf16.msra.mxu1 %v4485_v43  ;;  %v4582_v42 = vld [vmem:[%s6784_s3 + $0x140] ss:$8 sps:$4 sm:$0xff]  }
  0x2c   :  { %565 = vmatprep.subr.bf16.mxu0 %v4486_v44  ;;  %708 = vmatprep.subr.bf16.mxu1 %v4488_v45  ;;  %v4579_v43 = vld [vmem:[%s6784_s3] ss:$8 sps:$4 sm:$0xff]   ;;  %v4581_v44 = vld [vmem:[%s6784_s3 + $0x4] ss:$8 sps:$4 sm:$0xff]  }
  0x2d   :  { %v4548_v45 = vld [vmem:[%s6783_s0 + $0xa0] ss:$8 sps:$4 sm:$0xff]  }
  0x2f   :  { %566 = vmatpush2.bf16.msra.mxu0 %v4490_v46  ;;  %709 = vmatpush2.bf16.msra.mxu1 %v4491_v47  ;;  %v4590_v46 = vld [vmem:[%s6784_s3 + $0x134] ss:$8 sps:$4 sm:$0xff]   ;;  %v4588_v47 = vld [vmem:[%s6784_s3 + $0x130] ss:$8 sps:$4 sm:$0xff]  }
  0x30   :  { %567 = vmatprep.subr.bf16.mxu0 %v4492_v49  ;;  %710 = vmatprep.subr.bf16.mxu1 %v4494_v50  ;;  %v4587_v49 = vld [vmem:[%s6784_s3 + $0xf4] ss:$8 sps:$4 sm:$0xff]   ;;  %v4593_v50 = vld [vmem:[%s6784_s3 + $0x124] ss:$8 sps:$4 sm:$0xff]  }
  0x33   :  { %568 = vmatpush2.bf16.msra.mxu0 %v4496_v51  ;;  %711 = vmatpush2.bf16.msra.mxu1 %v4497_v52  ;;  %v4591_v51 = vld [vmem:[%s6784_s3 + $0x120] ss:$8 sps:$4 sm:$0xff]  }
  0x34   :  { %569 = vmatprep.subr.bf16.mxu0 %v4498_v53  ;;  %712 = vmatprep.subr.bf16.mxu1 %v4500_v54  ;;  %v4594_v52 = vld [vmem:[%s6784_s3 + $0xe0] ss:$8 sps:$4 sm:$0xff]   ;;  %v4596_v53 = vld [vmem:[%s6784_s3 + $0xe4] ss:$8 sps:$4 sm:$0xff]   ;;  %v4599_v54 = vld [vmem:[%s6784_s3 + $0x114] ss:$8 sps:$4 sm:$0xff]  }
  0x37   :  { %570 = vmatpush2.bf16.msra.mxu0 %v4502_v55  ;;  %713 = vmatpush2.bf16.msra.mxu1 %v4503_v56  ;;  %v4597_v55 = vld [vmem:[%s6784_s3 + $0x110] ss:$8 sps:$4 sm:$0xff]   ;;  %v4605_v56 = vld [vmem:[%s6784_s3 + $0x104] ss:$8 sps:$4 sm:$0xff]  }
  0x38   :  { %571 = vmatprep.subr.bf16.mxu0 %v4504_v57  ;;  %714 = vmatprep.subr.bf16.mxu1 %v4506_v58  ;;  %v4603_v57 = vld [vmem:[%s6784_s3 + $0x100] ss:$8 sps:$4 sm:$0xff]   ;;  %v4600_v58 = vld [vmem:[%s6784_s3 + $0xd0] ss:$8 sps:$4 sm:$0xff]  }
  0x3b   :  { %572 = vmatpush2.bf16.msra.mxu0 %v4508_v59  ;;  %715 = vmatpush2.bf16.msra.mxu1 %v4509_v60  ;;  %v4602_v59 = vld [vmem:[%s6784_s3 + $0xd4] ss:$8 sps:$4 sm:$0xff]  }
  0x3c   :  { %573 = vmatprep.subr.bf16.mxu0 %v4510_v61  ;;  %716 = vmatprep.subr.bf16.mxu1 %v4512_v62  ;;  %v4608_v60 = vld [vmem:[%s6784_s3 + $0x1f4] ss:$8 sps:$4 sm:$0xff]   ;;  %v4606_v61 = vld [vmem:[%s6784_s3 + $0x1f0] ss:$8 sps:$4 sm:$0xff]   ;;  %v4609_v62 = vld [vmem:[%s6784_s3 + $0xc0] ss:$8 sps:$4 sm:$0xff]  }
  0x3f   :  { %574 = vmatpush2.bf16.msra.mxu0 %v4514_v63  ;;  %717 = vmatpush2.bf16.msra.mxu1 %v4515_v0  ;;  %v4611_v63 = vld [vmem:[%s6784_s3 + $0xc4] ss:$8 sps:$4 sm:$0xff]  }
  0x40   :  { %3242 = vmatprep.subr.bf16.mxu0 %v4551_v1  ;;  %3283 = vmatprep.subr.bf16.mxu1 %v4569_v7  ;;  %v4614_v0 = vld [vmem:[%s6784_s3 + $0x1e4] ss:$8 sps:$4 sm:$0xff]   ;;  %v4612_v1 = vld [vmem:[%s6784_s3 + $0x1e0] ss:$8 sps:$4 sm:$0xff]  }
  0x41   :  { %v4624_v7 = vld [vmem:[%s6784_s3 + $0x1c0] ss:$8 sps:$4 sm:$0xff]  }
  0x42   :  { %576 = vmatmul.mubr.bf16.vlgmr.msra.gmra.mxu0 %v4516_v2  ;;  %719 = vmatmul.mubr.bf16.vlgmr.msra.gmra.mxu1 %v4516_v2  ;;  %v4615_v2 = vld [vmem:[%s6784_s3 + $0xb0] ss:$8 sps:$4 sm:$0xff]  }
  0x43   :  { %585 = vmatprep.mubr.bf16.mxu0 %v4519_v3  ;;  %728 = vmatprep.mubr.bf16.mxu1 %v4519_v3  ;;  %v4617_v3 = vld [vmem:[%s6784_s3 + $0xb4] ss:$8 sps:$4 sm:$0xff]  }
  0x44   :  { %3243 = vmatpush1.bf16.msra.mxu0 %v4549_v4  ;;  %3284 = vmatpush1.bf16.msra.mxu1 %v4567_v6  ;;  %v4620_v4 = vld [vmem:[%s6784_s3 + $0x1d4] ss:$8 sps:$4 sm:$0xff]   ;;  %v4626_v6 = vld [vmem:[%s6784_s3 + $0x1c4] ss:$8 sps:$4 sm:$0xff]  }
  0x45   :  { %3244 = vmatprep.subr.bf16.mxu0 %v4554_v5  ;;  %3285 = vmatprep.subr.bf16.mxu1 %v4572_v33  ;;  %v4618_v5 = vld [vmem:[%s6784_s3 + $0x1d0] ss:$8 sps:$4 sm:$0xff]  }
  0x48   :  { %3245 = vmatpush1.bf16.msra.mxu0 %v4552_v8  ;;  %3286 = vmatpush1.bf16.msra.mxu1 %v4570_v34  ;;  %v4621_v8 = vld [vmem:[%s6784_s3 + $0xa0] ss:$8 sps:$4 sm:$0xff]  }
  0x49   :  { %3246 = vmatprep.subr.bf16.mxu0 %v4557_v9  ;;  %3287 = vmatprep.subr.bf16.mxu1 %v4578_v39  ;;  %v4623_v9 = vld [vmem:[%s6784_s3 + $0xa4] ss:$8 sps:$4 sm:$0xff]  }
  0x4a   :  { %586 = vmatmul.mubr.bf16.gmra.mxu0 %v4521_v10  ;;  %729 = vmatmul.mubr.bf16.gmra.mxu1 %v4521_v10  ;;  %v4629_v10 = vld [vmem:[%s6784_s3 + $0x1b4] ss:$8 sps:$4 sm:$0xff]  }
  0x4b   :  { %595 = vmatprep.mubr.bf16.mxu0 %v4522_v11  ;;  %738 = vmatprep.mubr.bf16.mxu1 %v4522_v11  ;;  %v4627_v11 = vld [vmem:[%s6784_s3 + $0x1b0] ss:$8 sps:$4 sm:$0xff]  }
  0x4c   :  { %3247 = vmatpush1.bf16.msra.mxu0 %v4555_v12  ;;  %3288 = vmatpush1.bf16.msra.mxu1 %v4576_v40  ;;  %v4632_v12 = vld [vmem:[%s6784_s3 + $0x94] ss:$8 sps:$4 sm:$0xff]  }
  0x4d   :  { %3248 = vmatprep.subr.bf16.mxu0 %v4560_v13  ;;  %3289 = vmatprep.subr.bf16.mxu1 %v4584_v41  ;;  %v4635_v13 = vld [vmem:[%s6784_s3 + $0x1a4] ss:$8 sps:$4 sm:$0xff]  }
  0x50   :  { %3249 = vmatpush1.bf16.msra.mxu0 %v4558_v14  ;;  %3290 = vmatpush1.bf16.msra.mxu1 %v4582_v42  ;;  %v4630_v14 = vld [vmem:[%s6784_s3 + $0x90] ss:$8 sps:$4 sm:$0xff]  }
  0x51   :  { %3250 = vmatprep.subr.bf16.mxu0 %v4563_v15  ;;  %3291 = vmatprep.subr.bf16.mxu1 %v4590_v46  ;;  %v4633_v15 = vld [vmem:[%s6784_s3 + $0x1a0] ss:$8 sps:$4 sm:$0xff]  }
  0x52   :  { %596 = vmatmul.mubr.bf16.gmra.mxu0 %v4524_v16  ;;  %739 = vmatmul.mubr.bf16.gmra.mxu1 %v4524_v16  ;;  %v4638_v16 = vld [vmem:[%s6784_s3 + $0x84] ss:$8 sps:$4 sm:$0xff]  }
  0x53   :  { %605 = vmatprep.mubr.bf16.mxu0 %v4525_v17  ;;  %748 = vmatprep.mubr.bf16.mxu1 %v4525_v17  ;;  %v4641_v17 = vld [vmem:[%s6784_s3 + $0x194] ss:$8 sps:$4 sm:$0xff]  }
  0x54   :  { %3251 = vmatpush1.bf16.msra.mxu0 %v4561_v18  ;;  %3292 = vmatpush1.bf16.msra.mxu1 %v4588_v47  ;;  %v4636_v18 = vld [vmem:[%s6784_s3 + $0x80] ss:$8 sps:$4 sm:$0xff]  }
  0x55   :  { %3252 = vmatprep.subr.bf16.mxu0 %v4566_v19  ;;  %3293 = vmatprep.subr.bf16.mxu1 %v4593_v50  ;;  %v4639_v19 = vld [vmem:[%s6784_s3 + $0x190] ss:$8 sps:$4 sm:$0xff]  }
  0x58   :  { %3253 = vmatpush1.bf16.msra.mxu0 %v4564_v20  ;;  %3294 = vmatpush1.bf16.msra.mxu1 %v4591_v51  ;;  %v4644_v20 = vld [vmem:[%s6784_s3 + $0x184] ss:$8 sps:$4 sm:$0xff]  }
  0x59   :  { %3254 = vmatprep.subr.bf16.mxu0 %v4575_v38  ;;  %3295 = vmatprep.subr.bf16.mxu1 %v4599_v54 }
  0x5a   :  { %606 = vmatmul.mubr.bf16.gmra.mxu0 %v4527_v21  ;;  %749 = vmatmul.mubr.bf16.gmra.mxu1 %v4527_v21  ;;  %v4647_v21 = vld [vmem:[%s6784_s3 + $0x274] ss:$8 sps:$4 sm:$0xff]  }
  0x5b   :  { %615 = vmatprep.mubr.bf16.mxu0 %v4528_v22  ;;  %758 = vmatprep.mubr.bf16.mxu1 %v4528_v22  ;;  %v4642_v22 = vld [vmem:[%s6784_s3 + $0x180] ss:$8 sps:$4 sm:$0xff]  }
  0x5c   :  { %3255 = vmatpush1.bf16.msra.mxu0 %v4573_v37  ;;  %3296 = vmatpush1.bf16.msra.mxu1 %v4597_v55 }
  0x5d   :  { %3256 = vmatprep.subr.bf16.mxu0 %v4581_v44  ;;  %3297 = vmatprep.subr.bf16.mxu1 %v4605_v56 }
  0x60   :  { %3257 = vmatpush1.bf16.msra.mxu0 %v4579_v43  ;;  %3298 = vmatpush1.bf16.msra.mxu1 %v4603_v57 }
  0x61   :  { %3258 = vmatprep.subr.bf16.mxu0 %v4587_v49  ;;  %3299 = vmatprep.subr.bf16.mxu1 %v4608_v60 }
  0x62   :  { %616 = vmatmul.mubr.bf16.gmra.mxu0 %v4530_v23  ;;  %759 = vmatmul.mubr.bf16.gmra.mxu1 %v4530_v23  ;;  %v4653_v23 = vld [vmem:[%s6784_s3 + $0x374] ss:$8 sps:$4 sm:$0xff]  }
  0x63   :  { %625 = vmatprep.mubr.bf16.mxu0 %v4531_v24  ;;  %768 = vmatprep.mubr.bf16.mxu1 %v4531_v24 }
  0x64   :  { %3259 = vmatpush2.bf16.msra.mxu0 %v4585_v48  ;;  %3300 = vmatpush2.bf16.msra.mxu1 %v4606_v61 }
  0x65   :  { %3260 = vmatprep.subr.bf16.mxu0 %v4596_v53  ;;  %3301 = vmatprep.subr.bf16.mxu1 %v4614_v0 }
  0x68   :  { %3261 = vmatpush2.bf16.msra.mxu0 %v4594_v52  ;;  %3302 = vmatpush2.bf16.msra.mxu1 %v4612_v1 }
  0x69   :  { %3262 = vmatprep.subr.bf16.mxu0 %v4602_v59  ;;  %3303 = vmatprep.subr.bf16.mxu1 %v4620_v4 }
  0x6a   :  { %626 = vmatmul.mubr.bf16.gmra.mxu0 %v4533_v25  ;;  %769 = vmatmul.mubr.bf16.gmra.mxu1 %v4533_v25 }
  0x6b   :  { %635 = vmatprep.mubr.bf16.mxu0 %v4534_v26  ;;  %778 = vmatprep.mubr.bf16.mxu1 %v4534_v26 }
  0x6c   :  { %3263 = vmatpush2.bf16.msra.mxu0 %v4600_v58  ;;  %3304 = vmatpush2.bf16.msra.mxu1 %v4618_v5  ;;  %v897_v5 = vlaneseq }
  0x6d   :  { %3264 = vmatprep.subr.bf16.mxu0 %v4611_v63  ;;  %3305 = vmatprep.subr.bf16.mxu1 %v4626_v6 }
  0x70   :  { %3265 = vmatpush2.bf16.msra.mxu0 %v4609_v62  ;;  %3306 = vmatpush2.bf16.msra.mxu1 %v4624_v7 }
  0x71   :  { %3266 = vmatprep.subr.bf16.mxu0 %v4617_v3  ;;  %3307 = vmatprep.subr.bf16.mxu1 %v4629_v10 }
  0x72   :  { %636 = vmatmul.mubr.bf16.gmra.mxu0 %v4536_v27  ;;  %779 = vmatmul.mubr.bf16.gmra.mxu1 %v4536_v27 }
  0x73   :  { %645 = vmatprep.mubr.bf16.mxu0 %v4537_v28  ;;  %788 = vmatprep.mubr.bf16.mxu1 %v4537_v28 }
  0x74   :  { %3267 = vmatpush2.bf16.msra.mxu0 %v4615_v2  ;;  %3308 = vmatpush2.bf16.msra.mxu1 %v4627_v11 }
  0x75   :  { %3268 = vmatprep.subr.bf16.mxu0 %v4623_v9  ;;  %3309 = vmatprep.subr.bf16.mxu1 %v4635_v13 }
  0x78   :  { %3269 = vmatpush2.bf16.msra.mxu0 %v4621_v8  ;;  %3310 = vmatpush2.bf16.msra.mxu1 %v4633_v15 }
  0x79   :  { %3270 = vmatprep.subr.bf16.mxu0 %v4632_v12  ;;  %3311 = vmatprep.subr.bf16.mxu1 %v4641_v17  ;;  %v5691_v12 = vshrl.u32 %v897_v5, 7 }
  0x7a   :  { %646 = vmatmul.mubr.bf16.gmra.mxu0 %v4539_v29  ;;  %789 = vmatmul.mubr.bf16.gmra.mxu1 %v4539_v29 }
  0x7b   :  { %655 = vmatprep.mubr.bf16.mxu0 %v4540_v30  ;;  %798 = vmatprep.mubr.bf16.mxu1 %v4540_v30  ;;  %v6791_v5 = vsub.s32 1, %v5691_v12 }
  0x7c   :  { %3271 = vmatpush2.bf16.msra.mxu0 %v4630_v14  ;;  %3312 = vmatpush2.bf16.msra.mxu1 %v4639_v19  ;;  %v6790_v19 = vsub.s32 0, %v5691_v12 }
  0x7d   :  { %3272 = vmatprep.subr.bf16.mxu0 %v4638_v16  ;;  %3313 = vmatprep.subr.bf16.mxu1 %v4644_v20 }
  0x80   :  { %3273 = vmatpush2.bf16.msra.mxu0 %v4636_v18  ;;  %3314 = vmatpush2.bf16.msra.mxu1 %v4642_v22  ;;  %v895_v22 = vld [vmem:[%s6785_s2] sm:$0x3] }
  0x81   :  { %3324 = vmatprep.subr.bf16.mxu0 %v4647_v21  ;;  %3365 = vmatprep.subr.bf16.mxu1 %v4653_v23  ;;  %v5720_v4 = vrot.slane %v895_v22, %v6790_v19  ;;  %v5726_v23 = vrot.slane %v895_v22, %v6791_v5 }
  0x82   :  { %656 = vmatmul.mubr.bf16.gmra.mxu0 %v4542_v31  ;;  %799 = vmatmul.mubr.bf16.gmra.mxu1 %v4542_v31 }
  0x83   :  { %665 = vmatprep.mubr.bf16.mxu0 %v4543_v32  ;;  %808 = vmatprep.mubr.bf16.mxu1 %v4543_v32 }
  0x8a   :  { %666 = vmatmul.mubr.bf16.gmra.mxu0 %v4545_v35  ;;  %809 = vmatmul.mubr.bf16.gmra.mxu1 %v4545_v35 }
  0x8b   :  { %675 = vmatprep.mubr.bf16.mxu0 %v4546_v36  ;;  %818 = vmatprep.mubr.bf16.mxu1 %v4546_v36 }
  0x92   :  { %676 = vmatmul.mubr.bf16.gmra.mxu0 %v4548_v45  ;;  %819 = vmatmul.mubr.bf16.gmra.mxu1 %v4548_v45 }
 0x102   :  { %v5589_v24 = vpop.f32.mrf.mxu0  ;;  %v5591_v25 = vpop.f32.mrf.mxu1 }
 0x103   :  { %v829_v18 = vmax.f32 %v5589_v24, %v5591_v25 }
 0x104   :  { %v5593_v26 = vpop.f32.mrf.mxu0  ;;  %v5595_v27 = vpop.f32.mrf.mxu1 }
 0x105   :  { %v830_v59 = vmax.f32 %v5593_v26, %v5595_v27 }
 0x106   :  { %v5597_v28 = vpop.f32.mrf.mxu0  ;;  %v5599_v29 = vpop.f32.mrf.mxu1 }
 0x107   :  { %v831_v24 = vmax.f32 %v5597_v28, %v5599_v29 }
 0x108   :  { %v5601_v30 = vpop.f32.mrf.mxu0  ;;  %v5603_v31 = vpop.f32.mrf.mxu1 }
 0x109   :  { %v832_v26 = vmax.f32 %v5601_v30, %v5603_v31 }
 0x10a   :  { %v5605_v32 = vpop.f32.mrf.mxu0  ;;  %v5607_v33 = vpop.f32.mrf.mxu1 }
 0x10b   :  { %v833_v34 = vmax.f32 %v5605_v32, %v5607_v33  ;;  %v4650_v32 = vld [vmem:[%s6784_s3 + $0x264] ss:$8 sps:$4 sm:$0xff]  }
 0x10c   :  { %v5611_v35 = vpop.f32.mrf.mxu0  ;;  %v5613_v36 = vpop.f32.mrf.mxu1 }
 0x10e   :  { %v5615_v37 = vpop.f32.mrf.mxu0  ;;  %v5617_v38 = vpop.f32.mrf.mxu1 }
 0x110   :  { %v5621_v40 = vpop.f32.mrf.mxu0  ;;  %v5623_v41 = vpop.f32.mrf.mxu1 }
 0x112   :  { %v5625_v42 = vpop.f32.mrf.mxu0  ;;  %v5627_v43 = vpop.f32.mrf.mxu1 }
 0x114   :  { %v5631_v45 = vpop.f32.mrf.mxu0  ;;  %v5633_v46 = vpop.f32.mrf.mxu1 }
 0x116   :  { %v5637_v48 = vpop.f32.mrf.mxu0  ;;  %v5639_v49 = vpop.f32.mrf.mxu1 }
 0x118   :  { %v5643_v51 = vpop.f32.mrf.mxu0  ;;  %v5645_v52 = vpop.f32.mrf.mxu1 }
 0x11a   :  { %v5649_v54 = vpop.f32.mrf.mxu0  ;;  %v5651_v55 = vpop.f32.mrf.mxu1 }
 0x11c   :  { %v5655_v57 = vpop.f32.mrf.mxu0  ;;  %v5657_v58 = vpop.f32.mrf.mxu1 }
 0x11e   :  { %v5661_v60 = vpop.f32.mrf.mxu0  ;;  %v5663_v61 = vpop.f32.mrf.mxu1 }
 0x120   :  { %v5667_v63 = vpop.f32.mrf.mxu0  ;;  %v5669_v0 = vpop.f32.mrf.mxu1 }
 0x122   :  { %v5673_v2 = vpop.f32.mrf.mxu0  ;;  %v5675_v3 = vpop.f32.mrf.mxu1 }
 0x124   :  { %v5679_v6 = vpop.f32.mrf.mxu0  ;;  %v5681_v7 = vpop.f32.mrf.mxu1 }
 0x126   :  { %v5685_v9 = vpop.f32.mrf.mxu0  ;;  %v5687_v10 = vpop.f32.mrf.mxu1 }
 0x128   :  { %v5693_v13 = vpop.f32.mrf.mxu0  ;;  %v5695_v14 = vpop.f32.mrf.mxu1 }
 0x12a   :  { %v5699_v16 = vpop.f32.mrf.mxu0  ;;  %v5701_v17 = vpop.f32.mrf.mxu1 }
 0x12c   :  { %v5706_v20 = vpop.f32.mrf.mxu0  ;;  %v5708_v21 = vpop.f32.mrf.mxu1 }
 0x12e   :  { %v631_v15 = vpop.f32.mrf.mxu0  ;;  %v774_v11 = vpop.f32.mrf.mxu1 }
 0x12f   :  { %v851_v8 = vmax.f32 %v631_v15, %v774_v11 }
 0x130   :  { %v633_v1 = vpop.f32.mrf.mxu0  ;;  %v776_v62 = vpop.f32.mrf.mxu1 }
 0x131   :  { %v873_v56 = vmax.f32 %v829_v18, %v851_v8  ;;  %v852_v53 = vmax.f32 %v633_v1, %v776_v62 }
 0x132   :  { %v637_v50 = vpop.f32.mrf.mxu0  ;;  %v780_v47 = vpop.f32.mrf.mxu1 }
 0x133   :  { %v907_v25 = vadd.f32 %v5720_v4, %v873_v56  ;;  %v874_v11 = vmax.f32 %v830_v59, %v852_v53  ;;  %v853_v15 = vmax.f32 %v637_v50, %v780_v47  ;;  %v834_v47 = vmax.f32 %v5611_v35, %v5613_v36 }
 0x134   :  { %v639_v19 = vpop.f32.mrf.mxu0  ;;  %v782_v44 = vpop.f32.mrf.mxu1 }
 0x135   :  { %v908_v27 = vadd.f32 %v5726_v23, %v874_v11  ;;  %v875_v62 = vmax.f32 %v831_v24, %v853_v15  ;;  %v854_v1 = vmax.f32 %v639_v19, %v782_v44  ;;  %v929_v8 = vmax.f32 %v907_v25, 0.0  ;;  %v4645_v25 = vld [vmem:[%s6784_s3 + $0x270] ss:$8 sps:$4 sm:$0xff]  }
 0x136   :  { %v641_v18 = vpop.f32.mrf.mxu0  ;;  %v784_v22 = vpop.f32.mrf.mxu1 }
 0x137   :  { %v909_v5 = vadd.f32 %v5720_v4, %v875_v62  ;;  %v876_v39 = vmax.f32 %v832_v26, %v854_v1  ;;  %v855_v28 = vmax.f32 %v641_v18, %v784_v22  ;;  %v930_v53 = vmax.f32 %v908_v27, 0.0 }
 0x138   :  { %v643_v29 = vpop.f32.mrf.mxu0  ;;  %v786_v56 = vpop.f32.mrf.mxu1  ;;  %v4376_v44 = vpack.c.bf16 %v929_v8, %v929_v8  ;;  %v836_v26 = vmax.f32 %v5621_v40, %v5623_v41  ;;  %v4651_v40 = vld [vmem:[%s6784_s3 + $0x370] ss:$8 sps:$4 sm:$0xff]  }
 0x139   :  { %v910_v50 = vadd.f32 %v5726_v23, %v876_v39  ;;  %v877_v30 = vmax.f32 %v833_v34, %v855_v28  ;;  %v856_v31 = vmax.f32 %v643_v29, %v786_v56  ;;  %v4377_v24 = vpack.c.bf16 %v930_v53, %v930_v53  ;;  %v4648_v28 = vld [vmem:[%s6784_s3 + $0x260] ss:$8 sps:$4 sm:$0xff]   ;;  %v4656_v56 = vld [vmem:[%s6784_s3 + $0x254] ss:$8 sps:$4 sm:$0xff]  }
 0x13a   :  { %v647_v59 = vpop.f32.mrf.mxu0  ;;  %v790_v19 = vpop.f32.mrf.mxu1  ;;  %v931_v11 = vmax.f32 %v909_v5, 0.0  ;;  %v6792_v5 = vmax.f32 %v5615_v37, %v5617_v38 }
 0x13b   :  { %v5745_v15 = vadd.f32 %v5720_v4, %v877_v30  ;;  %v878_v35 = vmax.f32 %v834_v47, %v856_v31  ;;  %v857_v36 = vmax.f32 %v647_v59, %v790_v19  ;;  %3274 = vmatprep.mubr.bf16.mxu0 %v4377_v24  ;;  %v932_v39 = vmax.f32 %v910_v50, 0.0  ;;  %v4659_v30 = vld [vmem:[%s6784_s3 + $0x364] ss:$8 sps:$4 sm:$0xff]  }
 0x13c   :  { %v649_v33 = vpop.f32.mrf.mxu0  ;;  %v792_v34 = vpop.f32.mrf.mxu1  ;;  %3275 = vmatmul.mubr.bf16.vlgmr.msra.gmra.mxu0 %v4376_v44  ;;  %v4378_v41 = vpack.c.bf16 %v931_v11, %v931_v11  ;;  %v6793_v44 = vmax.f32 %v5625_v42, %v5627_v43  ;;  %v4654_v11 = vld [vmem:[%s6784_s3 + $0x250] ss:$8 sps:$4 sm:$0xff]   ;;  %v6794_v42 = vmax.f32 %v5631_v45, %v5633_v46  ;;  %v6795_v45 = vmax.f32 %v5637_v48, %v5639_v49 }
 0x13d   :  { %v912_v27 = vadd.f32 %v5726_v23, %v878_v35  ;;  %v879_v62 = vmax.f32 %v6792_v5, %v857_v36  ;;  %v858_v1 = vmax.f32 %v649_v33, %v792_v34  ;;  %3325 = vmatpush1.bf16.msra.mxu0 %v4645_v25  ;;  %v4379_v22 = vpack.c.bf16 %v932_v39, %v932_v39  ;;  %v4657_v36 = vld [vmem:[%s6784_s3 + $0x360] ss:$8 sps:$4 sm:$0xff]   ;;  %v4662_v34 = vld [vmem:[%s6784_s3 + $0x244] ss:$8 sps:$4 sm:$0xff]  }
 0x13e   :  { %v651_v8 = vpop.f32.mrf.mxu0  ;;  %v794_v18 = vpop.f32.mrf.mxu1  ;;  %3326 = vmatprep.subr.bf16.mxu0 %v4650_v32  ;;  %v6796_v48 = vmax.f32 %v5643_v51, %v5645_v52  ;;  %v6797_v51 = vmax.f32 %v5649_v54, %v5651_v55  ;;  %v6798_v54 = vmax.f32 %v5655_v57, %v5657_v58  ;;  %v6799_v57 = vmax.f32 %v5661_v60, %v5663_v61 }
 0x13f   :  { %v5763_v29 = vadd.f32 %v5720_v4, %v879_v62  ;;  %v880_v37 = vmax.f32 %v836_v26, %v858_v1  ;;  %v859_v38 = vmax.f32 %v651_v8, %v794_v18  ;;  %3315 = vmatprep.mubr.bf16.mxu1 %v4379_v22  ;;  %v934_v50 = vmax.f32 %v912_v27, 0.0  ;;  %v4665_v27 = vld [vmem:[%s6784_s3 + $0x354] ss:$8 sps:$4 sm:$0xff]   ;;  %v4660_v22 = vld [vmem:[%s6784_s3 + $0x240] ss:$8 sps:$4 sm:$0xff]  }
 0x140   :  { %v653_v53 = vpop.f32.mrf.mxu0  ;;  %v796_v47 = vpop.f32.mrf.mxu1  ;;  %3316 = vmatmul.mubr.bf16.vlgmr.msra.gmra.mxu1 %v4378_v41  ;;  %v6800_v60 = vmax.f32 %v5667_v63, %v5669_v0  ;;  %v6801_v63 = vmax.f32 %v5673_v2, %v5675_v3  ;;  %v6802_v2 = vmax.f32 %v5679_v6, %v5681_v7  ;;  %v6803_v6 = vmax.f32 %v5685_v9, %v5687_v10 }
 0x141   :  { %v914_v31 = vadd.f32 %v5726_v23, %v880_v37  ;;  %v881_v59 = vmax.f32 %v6793_v44, %v859_v38  ;;  %v860_v19 = vmax.f32 %v653_v53, %v796_v47  ;;  %3327 = vmatpush1.bf16.msra.mxu0 %v4648_v28  ;;  %3366 = vmatpush1.bf16.msra.mxu1 %v4651_v40  ;;  %v4663_v28 = vld [vmem:[%s6784_s3 + $0x350] ss:$8 sps:$4 sm:$0xff]   ;;  %v4668_v38 = vld [vmem:[%s6784_s3 + $0x234] ss:$8 sps:$4 sm:$0xff]   ;;  %v4671_v47 = vld [vmem:[%s6784_s3 + $0x344] ss:$8 sps:$4 sm:$0xff]  }
 0x142   :  { %v657_v24 = vpop.f32.mrf.mxu0  ;;  %v800_v25 = vpop.f32.mrf.mxu1  ;;  %v4381_v35 = vpack.c.bf16 %v934_v50, %v934_v50  ;;  %3328 = vmatprep.subr.bf16.mxu0 %v4656_v56  ;;  %3367 = vmatprep.subr.bf16.mxu1 %v4659_v30  ;;  %v6804_v9 = vmax.f32 %v5693_v13, %v5695_v14  ;;  %v6805_v13 = vmax.f32 %v5699_v16, %v5701_v17  ;;  %v4698_v16 = vld [vmem:[%s6784_s3 + $0x2e4] ss:$8 sps:$4 sm:$0xff]   ;;  %v4701_v17 = vld [vmem:[%s6784_s3 + $0x3f4] ss:$8 sps:$4 sm:$0xff]  }
 0x143   :  { %v5782_v32 = vadd.f32 %v5720_v4, %v881_v59  ;;  %v882_v43 = vmax.f32 %v6794_v42, %v860_v19  ;;  %v861_v33 = vmax.f32 %v657_v24, %v800_v25  ;;  %v936_v5 = vmax.f32 %v914_v31, 0.0  ;;  %v4666_v59 = vld [vmem:[%s6784_s3 + $0x230] ss:$8 sps:$4 sm:$0xff]   ;;  %v4669_v19 = vld [vmem:[%s6784_s3 + $0x340] ss:$8 sps:$4 sm:$0xff]  }
 0x144   :  { %3356 = vmatprep.mubr.bf16.mxu0 %v4381_v35  ;;  %v659_v39 = vpop.f32.mrf.mxu0  ;;  %v802_v26 = vpop.f32.mrf.mxu1  ;;  %v4677_v42 = vld [vmem:[%s6784_s3 + $0x334] ss:$8 sps:$4 sm:$0xff]  }
 0x145   :  { %v5794_v62 = vadd.f32 %v5726_v23, %v882_v43  ;;  %v883_v46 = vmax.f32 %v6795_v45, %v861_v33  ;;  %v862_v1 = vmax.f32 %v659_v39, %v802_v26  ;;  %3329 = vmatpush1.bf16.msra.mxu0 %v4654_v11  ;;  %3368 = vmatpush1.bf16.msra.mxu1 %v4657_v36  ;;  %v4674_v11 = vld [vmem:[%s6784_s3 + $0x224] ss:$8 sps:$4 sm:$0xff]   ;;  %v4672_v26 = vld [vmem:[%s6784_s3 + $0x220] ss:$8 sps:$4 sm:$0xff]  }
 0x146   :  { %v661_v8 = vpop.f32.mrf.mxu0  ;;  %v804_v18 = vpop.f32.mrf.mxu1  ;;  %v4383_v40 = vpack.c.bf16 %v936_v5, %v936_v5  ;;  %3330 = vmatprep.subr.bf16.mxu0 %v4662_v34  ;;  %3369 = vmatprep.subr.bf16.mxu1 %v4665_v27  ;;  %v4675_v27 = vld [vmem:[%s6784_s3 + $0x330] ss:$8 sps:$4 sm:$0xff]  }
 0x147   :  { %v5806_v41 = vadd.f32 %v5720_v4, %v883_v46  ;;  %v884_v49 = vmax.f32 %v6796_v48, %v862_v1  ;;  %v863_v37 = vmax.f32 %v661_v8, %v804_v18  ;;  %v4680_v46 = vld [vmem:[%s6784_s3 + $0x214] ss:$8 sps:$4 sm:$0xff]   ;;  %v4683_v18 = vld [vmem:[%s6784_s3 + $0x324] ss:$8 sps:$4 sm:$0xff]  }
 0x148   :  { %3397 = vmatprep.mubr.bf16.mxu1 %v4383_v40  ;;  %v663_v56 = vpop.f32.mrf.mxu0  ;;  %v806_v53 = vpop.f32.mrf.mxu1 }
 0x149   :  { %v5818_v50 = vadd.f32 %v5726_v23, %v884_v49  ;;  %v885_v52 = vmax.f32 %v6797_v51, %v863_v37  ;;  %v864_v30 = vmax.f32 %v663_v56, %v806_v53  ;;  %3331 = vmatpush1.bf16.msra.mxu0 %v4660_v22  ;;  %3370 = vmatpush1.bf16.msra.mxu1 %v4663_v28  ;;  %v4678_v49 = vld [vmem:[%s6784_s3 + $0x210] ss:$8 sps:$4 sm:$0xff]   ;;  %v4681_v37 = vld [vmem:[%s6784_s3 + $0x320] ss:$8 sps:$4 sm:$0xff]   ;;  %v4686_v53 = vld [vmem:[%s6784_s3 + $0x204] ss:$8 sps:$4 sm:$0xff]  }
 0x14a   :  { %v667_v31 = vpop.f32.mrf.mxu0  ;;  %v810_v44 = vpop.f32.mrf.mxu1  ;;  %3332 = vmatprep.subr.bf16.mxu0 %v4668_v38  ;;  %3371 = vmatprep.subr.bf16.mxu1 %v4671_v47 }
 0x14b   :  { %v5830_v24 = vadd.f32 %v5720_v4, %v885_v52  ;;  %v886_v55 = vmax.f32 %v6798_v54, %v864_v30  ;;  %v865_v25 = vmax.f32 %v667_v31, %v810_v44  ;;  %v4689_v52 = vld [vmem:[%s6784_s3 + $0x314] ss:$8 sps:$4 sm:$0xff]   ;;  %v4687_v54 = vld [vmem:[%s6784_s3 + $0x310] ss:$8 sps:$4 sm:$0xff]  }
 0x14c   :  { %v669_v35 = vpop.f32.mrf.mxu0  ;;  %v812_v36 = vpop.f32.mrf.mxu1 }
 0x14d   :  { %v5842_v43 = vadd.f32 %v5726_v23, %v886_v55  ;;  %v887_v58 = vmax.f32 %v6799_v57, %v865_v25  ;;  %v866_v33 = vmax.f32 %v669_v35, %v812_v36  ;;  %3333 = vmatpush1.bf16.msra.mxu0 %v4666_v59  ;;  %3372 = vmatpush1.bf16.msra.mxu1 %v4669_v19  ;;  %v4684_v19 = vld [vmem:[%s6784_s3 + $0x200] ss:$8 sps:$4 sm:$0xff]   ;;  %v4695_v35 = vld [vmem:[%s6784_s3 + $0x304] ss:$8 sps:$4 sm:$0xff]  }
 0x14e   :  { %v671_v34 = vpop.f32.mrf.mxu0  ;;  %v814_v39 = vpop.f32.mrf.mxu1  ;;  %3334 = vmatprep.subr.bf16.mxu0 %v4674_v11  ;;  %3373 = vmatprep.subr.bf16.mxu1 %v4677_v42  ;;  %v4692_v11 = vld [vmem:[%s6784_s3 + $0x2f4] ss:$8 sps:$4 sm:$0xff]  }
 0x14f   :  { %v5854_v5 = vadd.f32 %v5720_v4, %v887_v58  ;;  %v888_v61 = vmax.f32 %v6800_v60, %v866_v33  ;;  %v867_v45 = vmax.f32 %v671_v34, %v814_v39  ;;  %v4690_v33 = vld [vmem:[%s6784_s3 + $0x2f0] ss:$8 sps:$4 sm:$0xff]   ;;  %v4693_v34 = vld [vmem:[%s6784_s3 + $0x300] ss:$8 sps:$4 sm:$0xff]  }
 0x150   :  { %v673_v1 = vpop.f32.mrf.mxu0  ;;  %v816_v8 = vpop.f32.mrf.mxu1 }
 0x151   :  { %v5866_v22 = vadd.f32 %v5726_v23, %v888_v61  ;;  %v889_v0 = vmax.f32 %v6801_v63, %v867_v45  ;;  %v868_v28 = vmax.f32 %v673_v1, %v816_v8  ;;  %3335 = vmatpush1.bf16.msra.mxu0 %v4672_v26  ;;  %3374 = vmatpush1.bf16.msra.mxu1 %v4675_v27  ;;  %v4702_v61 = vld [vmem:[%s6784_s3 + $0x2d0] ss:$8 sps:$4 sm:$0xff]   ;;  %v4705_v45 = vld [vmem:[%s6784_s3 + $0x3e0] ss:$8 sps:$4 sm:$0xff]   ;;  %v4713_v1 = vld [vmem:[%s6784_s3 + $0x3d4] ss:$8 sps:$4 sm:$0xff]  }
 0x152   :  { %v677_v40 = vpop.f32.mrf.mxu0  ;;  %v820_v48 = vpop.f32.mrf.mxu1  ;;  %3336 = vmatprep.subr.bf16.mxu0 %v4680_v46  ;;  %3375 = vmatprep.subr.bf16.mxu1 %v4683_v18  ;;  %v6806_v26 = vmax.f32 %v5706_v20, %v5708_v21  ;;  %v4699_v20 = vld [vmem:[%s6784_s3 + $0x3f0] ss:$8 sps:$4 sm:$0xff]   ;;  %v4704_v21 = vld [vmem:[%s6784_s3 + $0x2d4] ss:$8 sps:$4 sm:$0xff]   ;;  %v4710_v46 = vld [vmem:[%s6784_s3 + $0x2c4] ss:$8 sps:$4 sm:$0xff]  }
 0x153   :  { %v5878_v38 = vadd.f32 %v5720_v4, %v889_v0  ;;  %v890_v3 = vmax.f32 %v6802_v2, %v868_v28  ;;  %v869_v56 = vmax.f32 %v677_v40, %v820_v48  ;;  %v4708_v8 = vld [vmem:[%s6784_s3 + $0x2c0] ss:$8 sps:$4 sm:$0xff]   ;;  %v4711_v18 = vld [vmem:[%s6784_s3 + $0x3d0] ss:$8 sps:$4 sm:$0xff]   ;;  %v4716_v63 = vld [vmem:[%s6784_s3 + $0x2b4] ss:$8 sps:$4 sm:$0xff]  }
 0x154   :  { %v679_v47 = vpop.f32.mrf.mxu0  ;;  %v822_v51 = vpop.f32.mrf.mxu1  ;;  %v4719_v0 = vld [vmem:[%s6784_s3 + $0x3c4] ss:$8 sps:$4 sm:$0xff]   ;;  %v4714_v28 = vld [vmem:[%s6784_s3 + $0x2b0] ss:$8 sps:$4 sm:$0xff]   ;;  %v4717_v40 = vld [vmem:[%s6784_s3 + $0x3c0] ss:$8 sps:$4 sm:$0xff]  }
 0x155   :  { %v5890_v30 = vadd.f32 %v5726_v23, %v890_v3  ;;  %v891_v7 = vmax.f32 %v6803_v6, %v869_v56  ;;  %v870_v31 = vmax.f32 %v679_v47, %v822_v51  ;;  %3337 = vmatpush1.bf16.msra.mxu0 %v4678_v49  ;;  %3376 = vmatpush1.bf16.msra.mxu1 %v4681_v37  ;;  %v4722_v48 = vld [vmem:[%s6784_s3 + $0x2a4] ss:$8 sps:$4 sm:$0xff]   ;;  %v4725_v49 = vld [vmem:[%s6784_s3 + $0x3b4] ss:$8 sps:$4 sm:$0xff]   ;;  %v4720_v37 = vld [vmem:[%s6784_s3 + $0x2a0] ss:$8 sps:$4 sm:$0xff]  }
 0x156   :  { %v681_v44 = vpop.f32.mrf.mxu0  ;;  %v824_v59 = vpop.f32.mrf.mxu1  ;;  %3338 = vmatprep.subr.bf16.mxu0 %v4686_v53  ;;  %3377 = vmatprep.subr.bf16.mxu1 %v4689_v52  ;;  %v4723_v2 = vld [vmem:[%s6784_s3 + $0x3b0] ss:$8 sps:$4 sm:$0xff]   ;;  %v4728_v3 = vld [vmem:[%s6784_s3 + $0x294] ss:$8 sps:$4 sm:$0xff]   ;;  %v4731_v56 = vld [vmem:[%s6784_s3 + $0x3a4] ss:$8 sps:$4 sm:$0xff]  }
 0x157   :  { %v5902_v55 = vadd.f32 %v5720_v4, %v891_v7  ;;  %v892_v10 = vmax.f32 %v6804_v9, %v870_v31  ;;  %v871_v25 = vmax.f32 %v681_v44, %v824_v59  ;;  %v4726_v53 = vld [vmem:[%s6784_s3 + $0x290] ss:$8 sps:$4 sm:$0xff]   ;;  %v4729_v47 = vld [vmem:[%s6784_s3 + $0x3a0] ss:$8 sps:$4 sm:$0xff]   ;;  %v4734_v51 = vld [vmem:[%s6784_s3 + $0x284] ss:$8 sps:$4 sm:$0xff]  }
 0x158   :  { %v683_v36 = vpop.f32.mrf.mxu0  ;;  %v826_v42 = vpop.f32.mrf.mxu1  ;;  %v4737_v52 = vld [vmem:[%s6784_s3 + $0x394] ss:$8 sps:$4 sm:$0xff]   ;;  %v4732_v6 = vld [vmem:[%s6784_s3 + $0x280] ss:$8 sps:$4 sm:$0xff]   ;;  %v4735_v7 = vld [vmem:[%s6784_s3 + $0x390] ss:$8 sps:$4 sm:$0xff]  }
 0x159   :  { %v5914_v57 = vadd.f32 %v5726_v23, %v892_v10  ;;  %v893_v14 = vmax.f32 %v6805_v13, %v871_v25  ;;  %v872_v58 = vmax.f32 %v683_v36, %v826_v42  ;;  %3339 = vmatpush1.bf16.msra.mxu0 %v4684_v19  ;;  %3378 = vmatpush1.bf16.msra.mxu1 %v4687_v54  ;;  %v933_v31 = vmax.f32 %v5745_v15, 0.0  ;;  %v4740_v44 = vld [vmem:[%s6784_s3 + $0x384] ss:$8 sps:$4 sm:$0xff]   ;;  %v4743_v59 = vld [vmem:[%s6784_s3 + $0x474] ss:$8 sps:$4 sm:$0xff]  }
 0x15a   :  { %3340 = vmatprep.subr.bf16.mxu0 %v4692_v11  ;;  %3379 = vmatprep.subr.bf16.mxu1 %v4695_v35  ;;  %v938_v19 = vmax.f32 %v5794_v62, 0.0  ;;  %v4738_v54 = vld [vmem:[%s6784_s3 + $0x380] ss:$8 sps:$4 sm:$0xff]   ;;  %v4741_v15 = vld [vmem:[%s6784_s3 + $0x470] ss:$8 sps:$4 sm:$0xff]   ;;  %v935_v10 = vmax.f32 %v5763_v29, 0.0 }
 0x15b   :  { %v5926_v39 = vadd.f32 %v5720_v4, %v893_v14  ;;  %v894_v27 = vmax.f32 %v6806_v26, %v872_v58  ;;  %v4696_v4 = vld [vmem:[%s6784_s3 + $0x2e0] ss:$8 sps:$4 sm:$0xff]   ;;  %v4380_v9 = vpack.c.bf16 %v933_v31, %v933_v31  ;;  %v4746_v25 = vld [vmem:[%s6784_s3 + $0x464] ss:$8 sps:$4 sm:$0xff]   ;;  %v4749_v62 = vld [vmem:[%s6784_s3 + $0x574] ss:$8 sps:$4 sm:$0xff]  }
 0x15c   :  { %v4385_v11 = vpack.c.bf16 %v938_v19, %v938_v19  ;;  %v940_v35 = vmax.f32 %v5818_v50, 0.0  ;;  %v4744_v29 = vld [vmem:[%s6784_s3 + $0x460] ss:$8 sps:$4 sm:$0xff]   ;;  %v4747_v36 = vld [vmem:[%s6784_s3 + $0x570] ss:$8 sps:$4 sm:$0xff]   ;;  %v4382_v42 = vpack.c.bf16 %v935_v10, %v935_v10 }
 0x15d   :  { %v5938_v60 = vadd.f32 %v5726_v23, %v894_v27  ;;  %3341 = vmatpush2.bf16.msra.mxu0 %v4690_v33  ;;  %3380 = vmatpush1.bf16.msra.mxu1 %v4693_v34  ;;  %v4707_v23 = vld [vmem:[%s6784_s3 + $0x3e4] ss:$8 sps:$4 sm:$0xff]   ;;  %v4752_v13 = vld [vmem:[%s6784_s3 + $0x454] ss:$8 sps:$4 sm:$0xff]   ;;  %v4750_v58 = vld [vmem:[%s6784_s3 + $0x450] ss:$8 sps:$4 sm:$0xff]  }
 0x15e   :  { %3342 = vmatprep.subr.bf16.mxu0 %v4698_v16  ;;  %3381 = vmatprep.subr.bf16.mxu1 %v4701_v17  ;;  %v4755_v50 = vld [vmem:[%s6784_s3 + $0x564] ss:$8 sps:$4 sm:$0xff]   ;;  %v4387_v14 = vpack.c.bf16 %v940_v35, %v940_v35  ;;  %v4753_v33 = vld [vmem:[%s6784_s3 + $0x560] ss:$8 sps:$4 sm:$0xff]   ;;  %v4761_v26 = vld [vmem:[%s6784_s3 + $0x554] ss:$8 sps:$4 sm:$0xff]  }
 0x15f   :  { %v4758_v34 = vld [vmem:[%s6784_s3 + $0x444] ss:$8 sps:$4 sm:$0xff]   ;;  %v4756_v27 = vld [vmem:[%s6784_s3 + $0x440] ss:$8 sps:$4 sm:$0xff]   ;;  %v4759_v16 = vld [vmem:[%s6784_s3 + $0x550] ss:$8 sps:$4 sm:$0xff]  }
 0x160   :  { %v4764_v17 = vld [vmem:[%s6784_s3 + $0x434] ss:$8 sps:$4 sm:$0xff]   ;;  %v4801_v31 = vld [vmem:[%s6784_s3 + $0x5e0] ss:$8 sps:$4 sm:$0xff]   ;;  %v4810_v10 = vld [vmem:[%s6784_s3 + $0x4b0] ss:$8 sps:$4 sm:$0xff]  }
 0x161   :  { %3343 = vmatpush2.bf16.msra.mxu0 %v4696_v4  ;;  %3382 = vmatpush2.bf16.msra.mxu1 %v4699_v20  ;;  %v4767_v4 = vld [vmem:[%s6784_s3 + $0x544] ss:$8 sps:$4 sm:$0xff]   ;;  %v4762_v20 = vld [vmem:[%s6784_s3 + $0x430] ss:$8 sps:$4 sm:$0xff]   ;;  %v4804_v19 = vld [vmem:[%s6784_s3 + $0x4c0] ss:$8 sps:$4 sm:$0xff]  }
 0x162   :  { %3344 = vmatprep.subr.bf16.mxu0 %v4704_v21  ;;  %3383 = vmatprep.subr.bf16.mxu1 %v4707_v23  ;;  %v4765_v21 = vld [vmem:[%s6784_s3 + $0x540] ss:$8 sps:$4 sm:$0xff]   ;;  %v4770_v23 = vld [vmem:[%s6784_s3 + $0x424] ss:$8 sps:$4 sm:$0xff]  }
 0x163   :  { %v4816_v35 = vld [vmem:[%s6784_s3 + $0x4a0] ss:$8 sps:$4 sm:$0xff]  }
 0x165   :  { %3345 = vmatpush2.bf16.msra.mxu0 %v4702_v61  ;;  %3384 = vmatpush2.bf16.msra.mxu1 %v4705_v45  ;;  %v4773_v61 = vld [vmem:[%s6784_s3 + $0x534] ss:$8 sps:$4 sm:$0xff]   ;;  %v4768_v45 = vld [vmem:[%s6784_s3 + $0x420] ss:$8 sps:$4 sm:$0xff]  }
 0x166   :  { %3346 = vmatprep.subr.bf16.mxu0 %v4710_v46  ;;  %3385 = vmatprep.subr.bf16.mxu1 %v4713_v1  ;;  %v4771_v46 = vld [vmem:[%s6784_s3 + $0x530] ss:$8 sps:$4 sm:$0xff]   ;;  %v4776_v1 = vld [vmem:[%s6784_s3 + $0x414] ss:$8 sps:$4 sm:$0xff]  }
 0x169   :  { %3347 = vmatpush2.bf16.msra.mxu0 %v4708_v8  ;;  %3386 = vmatpush2.bf16.msra.mxu1 %v4711_v18  ;;  %v4779_v8 = vld [vmem:[%s6784_s3 + $0x524] ss:$8 sps:$4 sm:$0xff]   ;;  %v4774_v18 = vld [vmem:[%s6784_s3 + $0x410] ss:$8 sps:$4 sm:$0xff]  }
 0x16a   :  { %3348 = vmatprep.subr.bf16.mxu0 %v4716_v63  ;;  %3387 = vmatprep.subr.bf16.mxu1 %v4719_v0  ;;  %v4777_v63 = vld [vmem:[%s6784_s3 + $0x520] ss:$8 sps:$4 sm:$0xff]   ;;  %v4782_v0 = vld [vmem:[%s6784_s3 + $0x404] ss:$8 sps:$4 sm:$0xff]  }
 0x16d   :  { %3349 = vmatpush2.bf16.msra.mxu0 %v4714_v28  ;;  %3388 = vmatpush2.bf16.msra.mxu1 %v4717_v40  ;;  %v4785_v28 = vld [vmem:[%s6784_s3 + $0x514] ss:$8 sps:$4 sm:$0xff]   ;;  %v4780_v40 = vld [vmem:[%s6784_s3 + $0x400] ss:$8 sps:$4 sm:$0xff]  }
 0x16e   :  { %3350 = vmatprep.subr.bf16.mxu0 %v4722_v48  ;;  %3389 = vmatprep.subr.bf16.mxu1 %v4725_v49  ;;  %v4783_v48 = vld [vmem:[%s6784_s3 + $0x510] ss:$8 sps:$4 sm:$0xff]   ;;  %v4788_v49 = vld [vmem:[%s6784_s3 + $0x4f4] ss:$8 sps:$4 sm:$0xff]  }
 0x171   :  { %3351 = vmatpush2.bf16.msra.mxu0 %v4720_v37  ;;  %3390 = vmatpush2.bf16.msra.mxu1 %v4723_v2  ;;  %v4791_v37 = vld [vmem:[%s6784_s3 + $0x504] ss:$8 sps:$4 sm:$0xff]   ;;  %v4786_v2 = vld [vmem:[%s6784_s3 + $0x4f0] ss:$8 sps:$4 sm:$0xff]  }
 0x172   :  { %3352 = vmatprep.subr.bf16.mxu0 %v4728_v3  ;;  %3391 = vmatprep.subr.bf16.mxu1 %v4731_v56  ;;  %v4789_v3 = vld [vmem:[%s6784_s3 + $0x500] ss:$8 sps:$4 sm:$0xff]   ;;  %v4794_v56 = vld [vmem:[%s6784_s3 + $0x4e4] ss:$8 sps:$4 sm:$0xff]  }
 0x175   :  { %3353 = vmatpush2.bf16.msra.mxu0 %v4726_v53  ;;  %3392 = vmatpush2.bf16.msra.mxu1 %v4729_v47  ;;  %v4797_v53 = vld [vmem:[%s6784_s3 + $0x5f4] ss:$8 sps:$4 sm:$0xff]   ;;  %v4792_v47 = vld [vmem:[%s6784_s3 + $0x4e0] ss:$8 sps:$4 sm:$0xff]  }
 0x176   :  { %3354 = vmatprep.subr.bf16.mxu0 %v4734_v51  ;;  %3393 = vmatprep.subr.bf16.mxu1 %v4737_v52  ;;  %v4795_v51 = vld [vmem:[%s6784_s3 + $0x5f0] ss:$8 sps:$4 sm:$0xff]   ;;  %v4800_v52 = vld [vmem:[%s6784_s3 + $0x4d4] ss:$8 sps:$4 sm:$0xff]  }
 0x179   :  { %3355 = vmatpush2.bf16.msra.mxu0 %v4732_v6  ;;  %3394 = vmatpush2.bf16.msra.mxu1 %v4735_v7  ;;  %v4803_v6 = vld [vmem:[%s6784_s3 + $0x5e4] ss:$8 sps:$4 sm:$0xff]   ;;  %v4798_v7 = vld [vmem:[%s6784_s3 + $0x4d0] ss:$8 sps:$4 sm:$0xff]  }
 0x17a   :  { %3395 = vmatprep.subr.bf16.mxu1 %v4740_v44  ;;  %3406 = vmatprep.subr.bf16.mxu0 %v4743_v59  ;;  %v4806_v44 = vld [vmem:[%s6784_s3 + $0x4c4] ss:$8 sps:$4 sm:$0xff]   ;;  %v4809_v59 = vld [vmem:[%s6784_s3 + $0x5d4] ss:$8 sps:$4 sm:$0xff]  }
 0x17c   :  { %3357 = vmatmul.mubr.bf16.vlgmr.msra.gmra.mxu0 %v4380_v9  ;;  %v4815_v9 = vld [vmem:[%s6784_s3 + $0x5c4] ss:$8 sps:$4 sm:$0xff]  }
 0x17d   :  { %3396 = vmatpush2.bf16.msra.mxu1 %v4738_v54  ;;  %3407 = vmatpush1.bf16.msra.mxu0 %v4741_v15  ;;  %v4807_v54 = vld [vmem:[%s6784_s3 + $0x5d0] ss:$8 sps:$4 sm:$0xff]   ;;  %v4812_v15 = vld [vmem:[%s6784_s3 + $0x4b4] ss:$8 sps:$4 sm:$0xff]  }
 0x17e   :  { %3438 = vmatprep.mubr.bf16.mxu0 %v4385_v11  ;;  %3408 = vmatprep.subr.bf16.mxu0 %v4746_v25  ;;  %v4813_v25 = vld [vmem:[%s6784_s3 + $0x5c0] ss:$8 sps:$4 sm:$0xff]   ;;  %v4821_v11 = vld [vmem:[%s6784_s3 + $0x5b4] ss:$8 sps:$4 sm:$0xff]  }
 0x17f   :  { %3447 = vmatprep.subr.bf16.mxu1 %v4749_v62  ;;  %v4818_v62 = vld [vmem:[%s6784_s3 + $0x4a4] ss:$8 sps:$4 sm:$0xff]  }
 0x180   :  { %3398 = vmatmul.mubr.bf16.vlgmr.msra.gmra.mxu1 %v4382_v42  ;;  %v4827_v42 = vld [vmem:[%s6784_s3 + $0x5a4] ss:$8 sps:$4 sm:$0xff]  }
 0x181   :  { %3409 = vmatpush1.bf16.msra.mxu0 %v4744_v29  ;;  %3448 = vmatpush1.bf16.msra.mxu1 %v4747_v36  ;;  %v4819_v29 = vld [vmem:[%s6784_s3 + $0x5b0] ss:$8 sps:$4 sm:$0xff]   ;;  %v4824_v36 = vld [vmem:[%s6784_s3 + $0x494] ss:$8 sps:$4 sm:$0xff]  }
 0x182   :  { %3479 = vmatprep.mubr.bf16.mxu1 %v4387_v14  ;;  %3410 = vmatprep.subr.bf16.mxu0 %v4752_v13  ;;  %v4822_v13 = vld [vmem:[%s6784_s3 + $0x490] ss:$8 sps:$4 sm:$0xff]   ;;  %v4830_v14 = vld [vmem:[%s6784_s3 + $0x484] ss:$8 sps:$4 sm:$0xff]  }
 0x183   :  { %3449 = vmatprep.subr.bf16.mxu1 %v4755_v50  ;;  %v4825_v50 = vld [vmem:[%s6784_s3 + $0x5a0] ss:$8 sps:$4 sm:$0xff]  }
 0x185   :  { %3411 = vmatpush1.bf16.msra.mxu0 %v4750_v58  ;;  %3450 = vmatpush1.bf16.msra.mxu1 %v4753_v33  ;;  %v4833_v58 = vld [vmem:[%s6784_s3 + $0x594] ss:$8 sps:$4 sm:$0xff]   ;;  %v4828_v33 = vld [vmem:[%s6784_s3 + $0x480] ss:$8 sps:$4 sm:$0xff]  }
 0x186   :  { %3412 = vmatprep.subr.bf16.mxu0 %v4758_v34  ;;  %3451 = vmatprep.subr.bf16.mxu1 %v4761_v26  ;;  %v4831_v34 = vld [vmem:[%s6784_s3 + $0x590] ss:$8 sps:$4 sm:$0xff]   ;;  %v937_v26 = vmax.f32 %v5782_v32, 0.0 }
 0x187   :  { %v4837_v32 = vld [vmem:[%s6784_s3 + $0x670] ss:$8 sps:$4 sm:$0xff]  }
 0x189   :  { %3413 = vmatpush1.bf16.msra.mxu0 %v4756_v27  ;;  %3452 = vmatpush1.bf16.msra.mxu1 %v4759_v16  ;;  %v4836_v27 = vld [vmem:[%s6784_s3 + $0x584] ss:$8 sps:$4 sm:$0xff]   ;;  %v4839_v16 = vld [vmem:[%s6784_s3 + $0x674] ss:$8 sps:$4 sm:$0xff]  }
 0x18a   :  { %3414 = vmatprep.subr.bf16.mxu0 %v4764_v17  ;;  %3453 = vmatprep.subr.bf16.mxu1 %v4767_v4  ;;  %v942_v17 = vmax.f32 %v5842_v43, 0.0  ;;  %v4834_v4 = vld [vmem:[%s6784_s3 + $0x580] ss:$8 sps:$4 sm:$0xff]   ;;  %v4845_v43 = vld [vmem:[%s6784_s3 + $0x774] ss:$8 sps:$4 sm:$0xff]  }
 0x18d   :  { %3415 = vmatpush1.bf16.msra.mxu0 %v4762_v20  ;;  %3454 = vmatpush1.bf16.msra.mxu1 %v4765_v21  ;;  %v4384_v20 = vpack.c.bf16 %v937_v26, %v937_v26  ;;  %v939_v21 = vmax.f32 %v5806_v41, 0.0  ;;  %v4840_v41 = vld [vmem:[%s6784_s3 + $0x660] ss:$8 sps:$4 sm:$0xff]   ;;  %v4903_v26 = vld [vmem:[%s6784_s3 + $0x7d0] ss:$8 sps:$4 sm:$0xff]  }
 0x18e   :  { %3416 = vmatprep.subr.bf16.mxu0 %v4770_v23  ;;  %3455 = vmatprep.subr.bf16.mxu1 %v4773_v61  ;;  %v4842_v23 = vld [vmem:[%s6784_s3 + $0x664] ss:$8 sps:$4 sm:$0xff]   ;;  %v4389_v61 = vpack.c.bf16 %v942_v17, %v942_v17  ;;  %v4906_v17 = vld [vmem:[%s6784_s3 + $0x6b0] ss:$8 sps:$4 sm:$0xff]  }
 0x191   :  { %3417 = vmatpush1.bf16.msra.mxu0 %v4768_v45  ;;  %3456 = vmatpush1.bf16.msra.mxu1 %v4771_v46  ;;  %v944_v45 = vmax.f32 %v5866_v22, 0.0  ;;  %v4843_v46 = vld [vmem:[%s6784_s3 + $0x770] ss:$8 sps:$4 sm:$0xff]   ;;  %v4851_v22 = vld [vmem:[%s6784_s3 + $0x764] ss:$8 sps:$4 sm:$0xff]  }
 0x192   :  { %3418 = vmatprep.subr.bf16.mxu0 %v4776_v1  ;;  %3457 = vmatprep.subr.bf16.mxu1 %v4779_v8  ;;  %v4386_v1 = vpack.c.bf16 %v939_v21, %v939_v21  ;;  %v4848_v8 = vld [vmem:[%s6784_s3 + $0x654] ss:$8 sps:$4 sm:$0xff]   ;;  %v4912_v21 = vld [vmem:[%s6784_s3 + $0x6a0] ss:$8 sps:$4 sm:$0xff]  }
 0x195   :  { %3419 = vmatpush1.bf16.msra.mxu0 %v4774_v18  ;;  %3458 = vmatpush1.bf16.msra.mxu1 %v4777_v63  ;;  %v4391_v18 = vpack.c.bf16 %v944_v45, %v944_v45  ;;  %v4846_v63 = vld [vmem:[%s6784_s3 + $0x650] ss:$8 sps:$4 sm:$0xff]  }
 0x196   :  { %3420 = vmatprep.subr.bf16.mxu0 %v4782_v0  ;;  %3459 = vmatprep.subr.bf16.mxu1 %v4785_v28  ;;  %v4849_v0 = vld [vmem:[%s6784_s3 + $0x760] ss:$8 sps:$4 sm:$0xff]   ;;  %v4854_v28 = vld [vmem:[%s6784_s3 + $0x644] ss:$8 sps:$4 sm:$0xff]   ;;  %v4918_v45 = vld [vmem:[%s6784_s3 + $0x690] ss:$8 sps:$4 sm:$0xff]  }
 0x199   :  { %3421 = vmatpush1.bf16.msra.mxu0 %v4780_v40  ;;  %3460 = vmatpush1.bf16.msra.mxu1 %v4783_v48  ;;  %v4857_v40 = vld [vmem:[%s6784_s3 + $0x754] ss:$8 sps:$4 sm:$0xff]   ;;  %v4852_v48 = vld [vmem:[%s6784_s3 + $0x640] ss:$8 sps:$4 sm:$0xff]  }
 0x19a   :  { %3422 = vmatprep.subr.bf16.mxu0 %v4788_v49  ;;  %3461 = vmatprep.subr.bf16.mxu1 %v4791_v37  ;;  %v4855_v49 = vld [vmem:[%s6784_s3 + $0x750] ss:$8 sps:$4 sm:$0xff]   ;;  %v4860_v37 = vld [vmem:[%s6784_s3 + $0x634] ss:$8 sps:$4 sm:$0xff]  }
 0x19d   :  { %3423 = vmatpush2.bf16.msra.mxu0 %v4786_v2  ;;  %3462 = vmatpush1.bf16.msra.mxu1 %v4789_v3  ;;  %v4863_v2 = vld [vmem:[%s6784_s3 + $0x744] ss:$8 sps:$4 sm:$0xff]   ;;  %v4858_v3 = vld [vmem:[%s6784_s3 + $0x630] ss:$8 sps:$4 sm:$0xff]  }
 0x19e   :  { %3424 = vmatprep.subr.bf16.mxu0 %v4794_v56  ;;  %3463 = vmatprep.subr.bf16.mxu1 %v4797_v53  ;;  %v4861_v56 = vld [vmem:[%s6784_s3 + $0x740] ss:$8 sps:$4 sm:$0xff]   ;;  %v4866_v53 = vld [vmem:[%s6784_s3 + $0x624] ss:$8 sps:$4 sm:$0xff]  }
 0x1a1   :  { %3425 = vmatpush2.bf16.msra.mxu0 %v4792_v47  ;;  %3464 = vmatpush2.bf16.msra.mxu1 %v4795_v51  ;;  %v4869_v47 = vld [vmem:[%s6784_s3 + $0x734] ss:$8 sps:$4 sm:$0xff]   ;;  %v4864_v51 = vld [vmem:[%s6784_s3 + $0x620] ss:$8 sps:$4 sm:$0xff]  }
 0x1a2   :  { %3426 = vmatprep.subr.bf16.mxu0 %v4800_v52  ;;  %3465 = vmatprep.subr.bf16.mxu1 %v4803_v6  ;;  %v4867_v52 = vld [vmem:[%s6784_s3 + $0x730] ss:$8 sps:$4 sm:$0xff]   ;;  %v4872_v6 = vld [vmem:[%s6784_s3 + $0x614] ss:$8 sps:$4 sm:$0xff]  }
 0x1a5   :  { %3427 = vmatpush2.bf16.msra.mxu0 %v4798_v7  ;;  %3466 = vmatpush2.bf16.msra.mxu1 %v4801_v31  ;;  %v4875_v7 = vld [vmem:[%s6784_s3 + $0x724] ss:$8 sps:$4 sm:$0xff]   ;;  %v4870_v31 = vld [vmem:[%s6784_s3 + $0x610] ss:$8 sps:$4 sm:$0xff]  }
 0x1a6   :  { %3428 = vmatprep.subr.bf16.mxu0 %v4806_v44  ;;  %3467 = vmatprep.subr.bf16.mxu1 %v4809_v59  ;;  %v4873_v44 = vld [vmem:[%s6784_s3 + $0x720] ss:$8 sps:$4 sm:$0xff]   ;;  %v4878_v59 = vld [vmem:[%s6784_s3 + $0x604] ss:$8 sps:$4 sm:$0xff]  }
 0x1a9   :  { %3429 = vmatpush2.bf16.msra.mxu0 %v4804_v19  ;;  %3468 = vmatpush2.bf16.msra.mxu1 %v4807_v54  ;;  %v4881_v19 = vld [vmem:[%s6784_s3 + $0x714] ss:$8 sps:$4 sm:$0xff]   ;;  %v4876_v54 = vld [vmem:[%s6784_s3 + $0x600] ss:$8 sps:$4 sm:$0xff]  }
 0x1aa   :  { %3430 = vmatprep.subr.bf16.mxu0 %v4812_v15  ;;  %3469 = vmatprep.subr.bf16.mxu1 %v4815_v9  ;;  %v4879_v15 = vld [vmem:[%s6784_s3 + $0x710] ss:$8 sps:$4 sm:$0xff]   ;;  %v4884_v9 = vld [vmem:[%s6784_s3 + $0x6f4] ss:$8 sps:$4 sm:$0xff]  }
 0x1ad   :  { %3431 = vmatpush2.bf16.msra.mxu0 %v4810_v10  ;;  %3470 = vmatpush2.bf16.msra.mxu1 %v4813_v25  ;;  %v4887_v10 = vld [vmem:[%s6784_s3 + $0x704] ss:$8 sps:$4 sm:$0xff]   ;;  %v4882_v25 = vld [vmem:[%s6784_s3 + $0x6f0] ss:$8 sps:$4 sm:$0xff]  }
 0x1ae   :  { %3432 = vmatprep.subr.bf16.mxu0 %v4818_v62  ;;  %3471 = vmatprep.subr.bf16.mxu1 %v4821_v11  ;;  %v4885_v62 = vld [vmem:[%s6784_s3 + $0x700] ss:$8 sps:$4 sm:$0xff]   ;;  %v4890_v11 = vld [vmem:[%s6784_s3 + $0x6e4] ss:$8 sps:$4 sm:$0xff]  }
 0x1b1   :  { %3433 = vmatpush2.bf16.msra.mxu0 %v4816_v35  ;;  %3472 = vmatpush2.bf16.msra.mxu1 %v4819_v29  ;;  %v4893_v35 = vld [vmem:[%s6784_s3 + $0x7f4] ss:$8 sps:$4 sm:$0xff]   ;;  %v4888_v29 = vld [vmem:[%s6784_s3 + $0x6e0] ss:$8 sps:$4 sm:$0xff]  }
 0x1b2   :  { %3434 = vmatprep.subr.bf16.mxu0 %v4824_v36  ;;  %3473 = vmatprep.subr.bf16.mxu1 %v4827_v42  ;;  %v4891_v36 = vld [vmem:[%s6784_s3 + $0x7f0] ss:$8 sps:$4 sm:$0xff]   ;;  %v4896_v42 = vld [vmem:[%s6784_s3 + $0x6d4] ss:$8 sps:$4 sm:$0xff]  }
 0x1b5   :  { %3435 = vmatpush2.bf16.msra.mxu0 %v4822_v13  ;;  %3474 = vmatpush2.bf16.msra.mxu1 %v4825_v50  ;;  %v4899_v13 = vld [vmem:[%s6784_s3 + $0x7e4] ss:$8 sps:$4 sm:$0xff]   ;;  %v4894_v50 = vld [vmem:[%s6784_s3 + $0x6d0] ss:$8 sps:$4 sm:$0xff]  }
 0x1b6   :  { %3436 = vmatprep.subr.bf16.mxu0 %v4830_v14  ;;  %3475 = vmatprep.subr.bf16.mxu1 %v4833_v58  ;;  %v4897_v14 = vld [vmem:[%s6784_s3 + $0x7e0] ss:$8 sps:$4 sm:$0xff]   ;;  %v4902_v58 = vld [vmem:[%s6784_s3 + $0x6c4] ss:$8 sps:$4 sm:$0xff]  }
 0x1b9   :  { %3437 = vmatpush2.bf16.msra.mxu0 %v4828_v33  ;;  %3476 = vmatpush2.bf16.msra.mxu1 %v4831_v34  ;;  %v4905_v33 = vld [vmem:[%s6784_s3 + $0x7d4] ss:$8 sps:$4 sm:$0xff]   ;;  %v4900_v34 = vld [vmem:[%s6784_s3 + $0x6c0] ss:$8 sps:$4 sm:$0xff]  }
 0x1ba   :  { %3477 = vmatprep.subr.bf16.mxu1 %v4836_v27  ;;  %3488 = vmatprep.subr.bf16.mxu0 %v4839_v16  ;;  %v4908_v27 = vld [vmem:[%s6784_s3 + $0x6b4] ss:$8 sps:$4 sm:$0xff]   ;;  %v4911_v16 = vld [vmem:[%s6784_s3 + $0x7c4] ss:$8 sps:$4 sm:$0xff]  }
 0x1bc   :  { %3439 = vmatmul.mubr.bf16.vlgmr.msra.gmra.mxu0 %v4384_v20  ;;  %v4917_v20 = vld [vmem:[%s6784_s3 + $0x7b4] ss:$8 sps:$4 sm:$0xff]  }
 0x1bd   :  { %3478 = vmatpush2.bf16.msra.mxu1 %v4834_v4  ;;  %3489 = vmatpush1.bf16.msra.mxu0 %v4837_v32  ;;  %v4909_v4 = vld [vmem:[%s6784_s3 + $0x7c0] ss:$8 sps:$4 sm:$0xff]   ;;  %v4914_v32 = vld [vmem:[%s6784_s3 + $0x6a4] ss:$8 sps:$4 sm:$0xff]  }
 0x1be   :  { %3520 = vmatprep.mubr.bf16.mxu0 %v4389_v61  ;;  %3490 = vmatprep.subr.bf16.mxu0 %v4842_v23  ;;  %v4915_v23 = vld [vmem:[%s6784_s3 + $0x7b0] ss:$8 sps:$4 sm:$0xff]   ;;  %v4923_v61 = vld [vmem:[%s6784_s3 + $0x7a4] ss:$8 sps:$4 sm:$0xff]  }
 0x1bf   :  { %3529 = vmatprep.subr.bf16.mxu1 %v4845_v43  ;;  %v4920_v43 = vld [vmem:[%s6784_s3 + $0x694] ss:$8 sps:$4 sm:$0xff]  }
 0x1c0   :  { %3480 = vmatmul.mubr.bf16.vlgmr.msra.gmra.mxu1 %v4386_v1  ;;  %v4929_v1 = vld [vmem:[%s6784_s3 + $0x794] ss:$8 sps:$4 sm:$0xff]  }
 0x1c1   :  { %3491 = vmatpush1.bf16.msra.mxu0 %v4840_v41  ;;  %3530 = vmatpush1.bf16.msra.mxu1 %v4843_v46  ;;  %v4921_v41 = vld [vmem:[%s6784_s3 + $0x7a0] ss:$8 sps:$4 sm:$0xff]   ;;  %v4926_v46 = vld [vmem:[%s6784_s3 + $0x684] ss:$8 sps:$4 sm:$0xff]  }
 0x1c2   :  { %3561 = vmatprep.mubr.bf16.mxu1 %v4391_v18  ;;  %3492 = vmatprep.subr.bf16.mxu0 %v4848_v8  ;;  %v4924_v8 = vld [vmem:[%s6784_s3 + $0x680] ss:$8 sps:$4 sm:$0xff]   ;;  %v941_v18 = vmax.f32 %v5830_v24, 0.0 }
 0x1c3   :  { %3531 = vmatprep.subr.bf16.mxu1 %v4851_v22  ;;  %v4927_v22 = vld [vmem:[%s6784_s3 + $0x790] ss:$8 sps:$4 sm:$0xff]   ;;  %v4930_v24 = vld [vmem:[%s6784_s3 + $0x780] ss:$8 sps:$4 sm:$0xff]  }
 0x1c5   :  { %3493 = vmatpush1.bf16.msra.mxu0 %v4846_v63  ;;  %3532 = vmatpush1.bf16.msra.mxu1 %v4849_v0  ;;  %v4932_v63 = vld [vmem:[%s6784_s3 + $0x784] ss:$8 sps:$4 sm:$0xff]   ;;  %v4935_v0 = vld [vmem:[%s6784_s3 + $0x874] ss:$8 sps:$4 sm:$0xff]  }
 0x1c6   :  { %3494 = vmatprep.subr.bf16.mxu0 %v4854_v28  ;;  %3533 = vmatprep.subr.bf16.mxu1 %v4857_v40  ;;  %v1393_v28 = vld [vmem:[%s6786_s4] sm:$0x3]  ;;  %v946_v40 = vmax.f32 %v5890_v30, 0.0  ;;  %v6807_v30 = vsub.s32 0, %v5691_v12 }
 0x1c9   :  { %3495 = vmatpush1.bf16.msra.mxu0 %v4852_v48  ;;  %3534 = vmatpush1.bf16.msra.mxu1 %v4855_v49  ;;  %v4933_v48 = vld [vmem:[%s6784_s3 + $0x870] ss:$8 sps:$4 sm:$0xff]   ;;  %v4388_v49 = vpack.c.bf16 %v941_v18, %v941_v18  ;;  %v4981_v18 = vld [vmem:[%s6784_s3 + $0x900] ss:$8 sps:$4 sm:$0xff]  }
 0x1ca   :  { %3496 = vmatprep.subr.bf16.mxu0 %v4860_v37  ;;  %3535 = vmatprep.subr.bf16.mxu1 %v4863_v2  ;;  %v943_v37 = vmax.f32 %v5854_v5, 0.0  ;;  %v4938_v2 = vld [vmem:[%s6784_s3 + $0x864] ss:$8 sps:$4 sm:$0xff]   ;;  %v6808_v5 = vsub.s32 1, %v5691_v12 }
 0x1cb   :  { %v4947_v12 = vld [vmem:[%s6784_s3 + $0x964] ss:$8 sps:$4 sm:$0xff]  }
 0x1cd   :  { %3497 = vmatpush1.bf16.msra.mxu0 %v4858_v3  ;;  %3536 = vmatpush1.bf16.msra.mxu1 %v4861_v56  ;;  %v1398_v3 = vrot.slane %v1393_v28, %v6807_v30  ;;  %v4941_v56 = vld [vmem:[%s6784_s3 + $0x974] ss:$8 sps:$4 sm:$0xff]  }
 0x1ce   :  { %3498 = vmatprep.subr.bf16.mxu0 %v4866_v53  ;;  %3537 = vmatprep.subr.bf16.mxu1 %v4869_v47  ;;  %v4393_v47 = vpack.c.bf16 %v946_v40, %v946_v40  ;;  %v4987_v40 = vld [vmem:[%s6784_s3 + $0x9f0] ss:$8 sps:$4 sm:$0xff]   ;;  %v5001_v30 = vld [vmem:[%s6784_s3 + $0x9d4] ss:$8 sps:$4 sm:$0xff]  }
 0x1d1   :  { %3499 = vmatpush1.bf16.msra.mxu0 %v4864_v51  ;;  %3538 = vmatpush1.bf16.msra.mxu1 %v4867_v52  ;;  %v948_v51 = vmax.f32 %v5914_v57, 0.0  ;;  %v1402_v52 = vrot.slane %v1393_v28, %v6808_v5  ;;  %v4944_v57 = vld [vmem:[%s6784_s3 + $0x854] ss:$8 sps:$4 sm:$0xff]   ;;  %v4984_v28 = vld [vmem:[%s6784_s3 + $0x8e0] ss:$8 sps:$4 sm:$0xff]  }
 0x1d2   :  { %3500 = vmatprep.subr.bf16.mxu0 %v4872_v6  ;;  %3539 = vmatprep.subr.bf16.mxu1 %v4875_v7  ;;  %v4936_v6 = vld [vmem:[%s6784_s3 + $0x860] ss:$8 sps:$4 sm:$0xff]   ;;  %v4939_v7 = vld [vmem:[%s6784_s3 + $0x970] ss:$8 sps:$4 sm:$0xff]  }
 0x1d3   :  { %v5005_v5 = vld [vmem:[%s6784_s3 + $0x9c0] ss:$8 sps:$4 sm:$0xff]  }
 0x1d5   :  { %3501 = vmatpush1.bf16.msra.mxu0 %v4870_v31  ;;  %3540 = vmatpush1.bf16.msra.mxu1 %v4873_v44  ;;  %v4390_v31 = vpack.c.bf16 %v943_v37, %v943_v37  ;;  %v4993_v37 = vld [vmem:[%s6784_s3 + $0x9e0] ss:$8 sps:$4 sm:$0xff]  }
 0x1d6   :  { %3502 = vmatprep.subr.bf16.mxu0 %v4878_v59  ;;  %3541 = vmatprep.subr.bf16.mxu1 %v4881_v19 }
 0x1d9   :  { %3503 = vmatpush1.bf16.msra.mxu0 %v4876_v54  ;;  %3542 = vmatpush1.bf16.msra.mxu1 %v4879_v15  ;;  %v4395_v15 = vpack.c.bf16 %v948_v51, %v948_v51  ;;  %v5002_v51 = vld [vmem:[%s6784_s3 + $0x8b0] ss:$8 sps:$4 sm:$0xff]  }
 0x1da   :  { %3504 = vmatprep.subr.bf16.mxu0 %v4884_v9  ;;  %3543 = vmatprep.subr.bf16.mxu1 %v4887_v10 }
 0x1dd   :  { %3505 = vmatpush2.bf16.msra.mxu0 %v4882_v25  ;;  %3544 = vmatpush1.bf16.msra.mxu1 %v4885_v62  ;;  %v4942_v25 = vld [vmem:[%s6784_s3 + $0x850] ss:$8 sps:$4 sm:$0xff]   ;;  %v4945_v62 = vld [vmem:[%s6784_s3 + $0x960] ss:$8 sps:$4 sm:$0xff]  }
 0x1de   :  { %3506 = vmatprep.subr.bf16.mxu0 %v4890_v11  ;;  %3545 = vmatprep.subr.bf16.mxu1 %v4893_v35 }
 0x1e1   :  { %3507 = vmatpush2.bf16.msra.mxu0 %v4888_v29  ;;  %3546 = vmatpush2.bf16.msra.mxu1 %v4891_v36  ;;  %v4950_v29 = vld [vmem:[%s6784_s3 + $0x844] ss:$8 sps:$4 sm:$0xff]   ;;  %v4953_v36 = vld [vmem:[%s6784_s3 + $0x954] ss:$8 sps:$4 sm:$0xff]  }
 0x1e2   :  { %3508 = vmatprep.subr.bf16.mxu0 %v4896_v42  ;;  %3547 = vmatprep.subr.bf16.mxu1 %v4899_v13 }
 0x1e5   :  { %3509 = vmatpush2.bf16.msra.mxu0 %v4894_v50  ;;  %3548 = vmatpush2.bf16.msra.mxu1 %v4897_v14  ;;  %v4948_v50 = vld [vmem:[%s6784_s3 + $0x840] ss:$8 sps:$4 sm:$0xff]   ;;  %v4951_v14 = vld [vmem:[%s6784_s3 + $0x950] ss:$8 sps:$4 sm:$0xff]  }
 0x1e6   :  { %3510 = vmatprep.subr.bf16.mxu0 %v4902_v58  ;;  %3549 = vmatprep.subr.bf16.mxu1 %v4905_v33  ;;  %v4956_v33 = vld [vmem:[%s6784_s3 + $0x834] ss:$8 sps:$4 sm:$0xff]  }
 0x1e9   :  { %3511 = vmatpush2.bf16.msra.mxu0 %v4900_v34  ;;  %3550 = vmatpush2.bf16.msra.mxu1 %v4903_v26  ;;  %v4959_v34 = vld [vmem:[%s6784_s3 + $0x944] ss:$8 sps:$4 sm:$0xff]   ;;  %v4954_v26 = vld [vmem:[%s6784_s3 + $0x830] ss:$8 sps:$4 sm:$0xff]  }
 0x1ea   :  { %3512 = vmatprep.subr.bf16.mxu0 %v4908_v27  ;;  %3551 = vmatprep.subr.bf16.mxu1 %v4911_v16  ;;  %v4957_v27 = vld [vmem:[%s6784_s3 + $0x940] ss:$8 sps:$4 sm:$0xff]   ;;  %v4962_v16 = vld [vmem:[%s6784_s3 + $0x824] ss:$8 sps:$4 sm:$0xff]  }
 0x1ed   :  { %3513 = vmatpush2.bf16.msra.mxu0 %v4906_v17  ;;  %3552 = vmatpush2.bf16.msra.mxu1 %v4909_v4  ;;  %v4965_v17 = vld [vmem:[%s6784_s3 + $0x934] ss:$8 sps:$4 sm:$0xff]   ;;  %v4960_v4 = vld [vmem:[%s6784_s3 + $0x820] ss:$8 sps:$4 sm:$0xff]  }
 0x1ee   :  { %3514 = vmatprep.subr.bf16.mxu0 %v4914_v32  ;;  %3553 = vmatprep.subr.bf16.mxu1 %v4917_v20  ;;  %v4963_v32 = vld [vmem:[%s6784_s3 + $0x930] ss:$8 sps:$4 sm:$0xff]   ;;  %v4968_v20 = vld [vmem:[%s6784_s3 + $0x814] ss:$8 sps:$4 sm:$0xff]  }
 0x1f1   :  { %3515 = vmatpush2.bf16.msra.mxu0 %v4912_v21  ;;  %3554 = vmatpush2.bf16.msra.mxu1 %v4915_v23  ;;  %v4971_v21 = vld [vmem:[%s6784_s3 + $0x924] ss:$8 sps:$4 sm:$0xff]   ;;  %v4966_v23 = vld [vmem:[%s6784_s3 + $0x810] ss:$8 sps:$4 sm:$0xff]  }
 0x1f2   :  { %3516 = vmatprep.subr.bf16.mxu0 %v4920_v43  ;;  %3555 = vmatprep.subr.bf16.mxu1 %v4923_v61  ;;  %v4969_v43 = vld [vmem:[%s6784_s3 + $0x920] ss:$8 sps:$4 sm:$0xff]   ;;  %v4974_v61 = vld [vmem:[%s6784_s3 + $0x804] ss:$8 sps:$4 sm:$0xff]  }
 0x1f5   :  { %3517 = vmatpush2.bf16.msra.mxu0 %v4918_v45  ;;  %3556 = vmatpush2.bf16.msra.mxu1 %v4921_v41  ;;  %v4977_v45 = vld [vmem:[%s6784_s3 + $0x914] ss:$8 sps:$4 sm:$0xff]   ;;  %v4972_v41 = vld [vmem:[%s6784_s3 + $0x800] ss:$8 sps:$4 sm:$0xff]  }
 0x1f6   :  { %3518 = vmatprep.subr.bf16.mxu0 %v4926_v46  ;;  %3557 = vmatprep.subr.bf16.mxu1 %v4929_v1  ;;  %v4975_v46 = vld [vmem:[%s6784_s3 + $0x910] ss:$8 sps:$4 sm:$0xff]   ;;  %v4980_v1 = vld [vmem:[%s6784_s3 + $0x8f4] ss:$8 sps:$4 sm:$0xff]  }
 0x1f9   :  { %3519 = vmatpush2.bf16.msra.mxu0 %v4924_v8  ;;  %3558 = vmatpush2.bf16.msra.mxu1 %v4927_v22  ;;  %v4983_v8 = vld [vmem:[%s6784_s3 + $0x904] ss:$8 sps:$4 sm:$0xff]   ;;  %v4978_v22 = vld [vmem:[%s6784_s3 + $0x8f0] ss:$8 sps:$4 sm:$0xff]  }
 0x1fa   :  { %3559 = vmatprep.subr.bf16.mxu1 %v4932_v63  ;;  %3570 = vmatprep.subr.bf16.mxu0 %v4935_v0  ;;  %v4986_v63 = vld [vmem:[%s6784_s3 + $0x8e4] ss:$8 sps:$4 sm:$0xff]   ;;  %v4989_v0 = vld [vmem:[%s6784_s3 + $0x9f4] ss:$8 sps:$4 sm:$0xff]  }
 0x1fc   :  { %3521 = vmatmul.mubr.bf16.vlgmr.msra.gmra.mxu0 %v4388_v49  ;;  %v3276_v53 = vpop.f32.mrf.mxu0  ;;  %v4990_v49 = vld [vmem:[%s6784_s3 + $0x8d0] ss:$8 sps:$4 sm:$0xff]  }
 0x1fd   :  { %3560 = vmatpush2.bf16.msra.mxu1 %v4930_v24  ;;  %3571 = vmatpush1.bf16.msra.mxu0 %v4933_v48  ;;  %v3277_v59 = vadd.f32 %v3276_v53, %v1398_v3  ;;  %v4992_v24 = vld [vmem:[%s6784_s3 + $0x8d4] ss:$8 sps:$4 sm:$0xff]   ;;  %v4995_v48 = vld [vmem:[%s6784_s3 + $0x9e4] ss:$8 sps:$4 sm:$0xff]   ;;  %v4996_v3 = vld [vmem:[%s6784_s3 + $0x8c0] ss:$8 sps:$4 sm:$0xff]  }
 0x1fe   :  { %3602 = vmatprep.mubr.bf16.mxu0 %v4393_v47  ;;  %v3278_v44 = vpop.f32.mrf.mxu0  ;;  %3572 = vmatprep.subr.bf16.mxu0 %v4938_v2  ;;  %v4998_v2 = vld [vmem:[%s6784_s3 + $0x8c4] ss:$8 sps:$4 sm:$0xff]   ;;  %v5004_v53 = vld [vmem:[%s6784_s3 + $0x8b4] ss:$8 sps:$4 sm:$0xff]  }
 0x1ff   :  { %3611 = vmatprep.subr.bf16.mxu1 %v4941_v56  ;;  %v3279_v9 = vadd.f32 %v3278_v44, %v1402_v52  ;;  %v4999_v56 = vld [vmem:[%s6784_s3 + $0x9d0] ss:$8 sps:$4 sm:$0xff]   ;;  %v5007_v47 = vld [vmem:[%s6784_s3 + $0x9c4] ss:$8 sps:$4 sm:$0xff]   ;;  %v5016_v44 = vld [vmem:[%s6784_s3 + $0x894] ss:$8 sps:$4 sm:$0xff]  }
 0x200   :  { %3562 = vmatmul.mubr.bf16.vlgmr.msra.gmra.mxu1 %v4390_v31  ;;  %v3280_v19 = vpop.f32.mrf.mxu0  ;;  %v3317_v54 = vpop.f32.mrf.mxu1  ;;  %v5010_v52 = vld [vmem:[%s6784_s3 + $0x8a4] ss:$8 sps:$4 sm:$0xff]   ;;  %v5011_v31 = vld [vmem:[%s6784_s3 + $0x9b0] ss:$8 sps:$4 sm:$0xff]  }
 0x201   :  { %v6451_v10 = vadd.f32 %v3317_v54, %v3277_v59  ;;  %3573 = vmatpush1.bf16.msra.mxu0 %v4936_v6  ;;  %3612 = vmatpush1.bf16.msra.mxu1 %v4939_v7  ;;  %v5013_v6 = vld [vmem:[%s6784_s3 + $0x9b4] ss:$8 sps:$4 sm:$0xff]   ;;  %v5008_v7 = vld [vmem:[%s6784_s3 + $0x8a0] ss:$8 sps:$4 sm:$0xff]   ;;  %v5014_v59 = vld [vmem:[%s6784_s3 + $0x890] ss:$8 sps:$4 sm:$0xff]  }
 0x202   :  { %3643 = vmatprep.mubr.bf16.mxu1 %v4395_v15  ;;  %v3281_v11 = vpop.f32.mrf.mxu0  ;;  %v3319_v35 = vpop.f32.mrf.mxu1  ;;  %3574 = vmatprep.subr.bf16.mxu0 %v4944_v57  ;;  %v5019_v57 = vld [vmem:[%s6784_s3 + $0x9a4] ss:$8 sps:$4 sm:$0xff]   ;;  %v5025_v54 = vld [vmem:[%s6784_s3 + $0x994] ss:$8 sps:$4 sm:$0xff]   ;;  %v5020_v15 = vld [vmem:[%s6784_s3 + $0x880] ss:$8 sps:$4 sm:$0xff]  }
 0x203   :  { %v6465_v42 = vadd.f32 %v3319_v35, %v3279_v9  ;;  %3613 = vmatprep.subr.bf16.mxu1 %v4947_v12  ;;  %v5017_v12 = vld [vmem:[%s6784_s3 + $0x9a0] ss:$8 sps:$4 sm:$0xff]   ;;  %v5022_v19 = vld [vmem:[%s6784_s3 + $0x884] ss:$8 sps:$4 sm:$0xff]   ;;  %v5023_v9 = vld [vmem:[%s6784_s3 + $0x990] ss:$8 sps:$4 sm:$0xff]  }
 0x204   :  { %v3321_v13 = vpop.f32.mrf.mxu1  ;;  %v5031_v11 = vld [vmem:[%s6784_s3 + $0xa74] ss:$8 sps:$4 sm:$0xff]   ;;  %v950_v35 = vmax.f32 %v5938_v60, 0.0 }
 0x205   :  { %3575 = vmatpush1.bf16.msra.mxu0 %v4942_v25  ;;  %3614 = vmatpush1.bf16.msra.mxu1 %v4945_v62  ;;  %v945_v25 = vmax.f32 %v5878_v38, 0.0  ;;  %v5028_v62 = vld [vmem:[%s6784_s3 + $0x984] ss:$8 sps:$4 sm:$0xff]   ;;  %v5029_v38 = vld [vmem:[%s6784_s3 + $0xa70] ss:$8 sps:$4 sm:$0xff]   ;;  %v947_v13 = vmax.f32 %v5902_v55, 0.0 }
 0x206   :  { %v3322_v58 = vpop.f32.mrf.mxu1  ;;  %3576 = vmatprep.subr.bf16.mxu0 %v4950_v29  ;;  %3615 = vmatprep.subr.bf16.mxu1 %v4953_v36  ;;  %v5026_v29 = vld [vmem:[%s6784_s3 + $0x980] ss:$8 sps:$4 sm:$0xff]  }
 0x207   :  { %v4392_v36 = vpack.c.bf16 %v945_v25, %v945_v25 }
 0x209   :  { %3577 = vmatpush1.bf16.msra.mxu0 %v4948_v50  ;;  %3616 = vmatpush1.bf16.msra.mxu1 %v4951_v14  ;;  %v5034_v50 = vld [vmem:[%s6784_s3 + $0xa64] ss:$8 sps:$4 sm:$0xff]   ;;  %v4397_v14 = vpack.c.bf16 %v950_v35, %v950_v35  ;;  %v5078_v35 = vld [vmem:[%s6787_s5 + $0x38] sm:$0xff]  }
 0x20a   :  { %3578 = vmatprep.subr.bf16.mxu0 %v4956_v33  ;;  %3617 = vmatprep.subr.bf16.mxu1 %v4959_v34  ;;  %v5032_v33 = vld [vmem:[%s6784_s3 + $0xa60] ss:$8 sps:$4 sm:$0xff]   ;;  %v4394_v34 = vpack.c.bf16 %v947_v13, %v947_v13 }
 0x20b   :  { %v5082_v13 = vld [vmem:[%s6787_s5 + $0x28] sm:$0xff]  }
 0x20d   :  { %3579 = vmatpush1.bf16.msra.mxu0 %v4954_v26  ;;  %3618 = vmatpush1.bf16.msra.mxu1 %v4957_v27  ;;  %v5037_v26 = vld [vmem:[%s6784_s3 + $0xa54] ss:$8 sps:$4 sm:$0xff]  }
 0x20e   :  { %3580 = vmatprep.subr.bf16.mxu0 %v4962_v16  ;;  %3619 = vmatprep.subr.bf16.mxu1 %v4965_v17 }
 0x211   :  { %3581 = vmatpush1.bf16.msra.mxu0 %v4960_v4  ;;  %3620 = vmatpush1.bf16.msra.mxu1 %v4963_v32  ;;  %v5035_v4 = vld [vmem:[%s6784_s3 + $0xa50] ss:$8 sps:$4 sm:$0xff]  }
 0x212   :  { %3582 = vmatprep.subr.bf16.mxu0 %v4968_v20  ;;  %3621 = vmatprep.subr.bf16.mxu1 %v4971_v21  ;;  %v5040_v21 = vld [vmem:[%s6784_s3 + $0xa44] ss:$8 sps:$4 sm:$0xff]  }
 0x215   :  { %3583 = vmatpush1.bf16.msra.mxu0 %v4966_v23  ;;  %3622 = vmatpush1.bf16.msra.mxu1 %v4969_v43 }
 0x216   :  { %3584 = vmatprep.subr.bf16.mxu0 %v4974_v61  ;;  %3623 = vmatprep.subr.bf16.mxu1 %v4977_v45  ;;  %v5043_v45 = vld [vmem:[%s6784_s3 + $0xa34] ss:$8 sps:$4 sm:$0xff]  }
 0x219   :  { %3585 = vmatpush1.bf16.msra.mxu0 %v4972_v41  ;;  %3624 = vmatpush1.bf16.msra.mxu1 %v4975_v46  ;;  %v5041_v41 = vld [vmem:[%s6784_s3 + $0xa30] ss:$8 sps:$4 sm:$0xff]   ;;  %v5046_v46 = vld [vmem:[%s6784_s3 + $0xa24] ss:$8 sps:$4 sm:$0xff]  }
 0x21a   :  { %3586 = vmatprep.subr.bf16.mxu0 %v4980_v1  ;;  %3625 = vmatprep.subr.bf16.mxu1 %v4983_v8  ;;  %v5044_v1 = vld [vmem:[%s6784_s3 + $0xa20] ss:$8 sps:$4 sm:$0xff]   ;;  %v5049_v8 = vld [vmem:[%s6784_s3 + $0xa14] ss:$8 sps:$4 sm:$0xff]  }
 0x21d   :  { %3587 = vmatpush2.bf16.msra.mxu0 %v4978_v22  ;;  %3626 = vmatpush1.bf16.msra.mxu1 %v4981_v18  ;;  %v5047_v22 = vld [vmem:[%s6784_s3 + $0xa10] ss:$8 sps:$4 sm:$0xff]   ;;  %v5052_v18 = vld [vmem:[%s6784_s3 + $0xa04] ss:$8 sps:$4 sm:$0xff]  }
 0x21e   :  { %3588 = vmatprep.subr.bf16.mxu0 %v4986_v63  ;;  %3627 = vmatprep.subr.bf16.mxu1 %v4989_v0  ;;  %v5050_v63 = vld [vmem:[%s6784_s3 + $0xa00] ss:$8 sps:$4 sm:$0xff]   ;;  %v5055_v0 = vld [vmem:[%s6784_s3 + $0xaf4] ss:$8 sps:$4 sm:$0xff]  }
 0x221   :  { %3589 = vmatpush2.bf16.msra.mxu0 %v4984_v28  ;;  %3628 = vmatpush2.bf16.msra.mxu1 %v4987_v40  ;;  %v5053_v28 = vld [vmem:[%s6784_s3 + $0xaf0] ss:$8 sps:$4 sm:$0xff]   ;;  %v5058_v40 = vld [vmem:[%s6784_s3 + $0xae4] ss:$8 sps:$4 sm:$0xff]  }
 0x222   :  { %3590 = vmatprep.subr.bf16.mxu0 %v4992_v24  ;;  %3629 = vmatprep.subr.bf16.mxu1 %v4995_v48  ;;  %v5056_v24 = vld [vmem:[%s6784_s3 + $0xae0] ss:$8 sps:$4 sm:$0xff]   ;;  %v5061_v48 = vld [vmem:[%s6784_s3 + $0xad4] ss:$8 sps:$4 sm:$0xff]  }
 0x225   :  { %3591 = vmatpush2.bf16.msra.mxu0 %v4990_v49  ;;  %3630 = vmatpush2.bf16.msra.mxu1 %v4993_v37  ;;  %v5059_v49 = vld [vmem:[%s6784_s3 + $0xad0] ss:$8 sps:$4 sm:$0xff]   ;;  %v5064_v37 = vld [vmem:[%s6784_s3 + $0xac4] ss:$8 sps:$4 sm:$0xff]  }
 0x226   :  { %3592 = vmatprep.subr.bf16.mxu0 %v4998_v2  ;;  %3631 = vmatprep.subr.bf16.mxu1 %v5001_v30  ;;  %v5062_v2 = vld [vmem:[%s6784_s3 + $0xac0] ss:$8 sps:$4 sm:$0xff]   ;;  %v5067_v30 = vld [vmem:[%s6784_s3 + $0xab4] ss:$8 sps:$4 sm:$0xff]  }
 0x229   :  { %3593 = vmatpush2.bf16.msra.mxu0 %v4996_v3  ;;  %3632 = vmatpush2.bf16.msra.mxu1 %v4999_v56  ;;  %v5065_v3 = vld [vmem:[%s6784_s3 + $0xab0] ss:$8 sps:$4 sm:$0xff]   ;;  %v5070_v56 = vld [vmem:[%s6784_s3 + $0xaa4] ss:$8 sps:$4 sm:$0xff]  }
 0x22a   :  { %3594 = vmatprep.subr.bf16.mxu0 %v5004_v53  ;;  %3633 = vmatprep.subr.bf16.mxu1 %v5007_v47  ;;  %v5068_v53 = vld [vmem:[%s6784_s3 + $0xaa0] ss:$8 sps:$4 sm:$0xff]   ;;  %v5073_v47 = vld [vmem:[%s6784_s3 + $0xa94] ss:$8 sps:$4 sm:$0xff]  }
 0x22d   :  { %3595 = vmatpush2.bf16.msra.mxu0 %v5002_v51  ;;  %3634 = vmatpush2.bf16.msra.mxu1 %v5005_v5  ;;  %v5071_v51 = vld [vmem:[%s6784_s3 + $0xa90] ss:$8 sps:$4 sm:$0xff]   ;;  %v5076_v5 = vld [vmem:[%s6784_s3 + $0xa84] ss:$8 sps:$4 sm:$0xff]  }
 0x22e   :  { %3596 = vmatprep.subr.bf16.mxu0 %v5010_v52  ;;  %3635 = vmatprep.subr.bf16.mxu1 %v5013_v6  ;;  %v5074_v52 = vld [vmem:[%s6784_s3 + $0xa80] ss:$8 sps:$4 sm:$0xff]   ;;  %v949_v6 = vmax.f32 %v5926_v39, 0.0  ;;  %v5077_v39 = vld [vmem:[%s6787_s5 + $0x78] sm:$0xff]  }
 0x231   :  { %3597 = vmatpush2.bf16.msra.mxu0 %v5008_v7  ;;  %3636 = vmatpush2.bf16.msra.mxu1 %v5011_v31  ;;  %v4396_v7 = vpack.c.bf16 %v949_v6, %v949_v6 }
 0x232   :  { %3598 = vmatprep.subr.bf16.mxu0 %v5016_v44  ;;  %3637 = vmatprep.subr.bf16.mxu1 %v5019_v57 }
 0x235   :  { %3599 = vmatpush2.bf16.msra.mxu0 %v5014_v59  ;;  %3638 = vmatpush2.bf16.msra.mxu1 %v5017_v12 }
 0x236   :  { %3600 = vmatprep.subr.bf16.mxu0 %v5022_v19  ;;  %3639 = vmatprep.subr.bf16.mxu1 %v5025_v54 }
 0x239   :  { %3601 = vmatpush2.bf16.msra.mxu0 %v5020_v15  ;;  %3640 = vmatpush2.bf16.msra.mxu1 %v5023_v9 }
 0x23a   :  { %3641 = vmatprep.subr.bf16.mxu1 %v5028_v62  ;;  %3652 = vmatprep.subr.bf16.mxu0 %v5031_v11 }
 0x23c   :  { %v3358_v60 = vpop.f32.mrf.mxu0  ;;  %3603 = vmatmul.mubr.bf16.vlgmr.msra.gmra.mxu0 %v4392_v36  ;;  %v5081_v36 = vld [vmem:[%s6787_s5 + $0x68] sm:$0xff]  }
 0x23d   :  { %v3359_v58 = vadd.f32 %v3358_v60, %v6451_v10  ;;  %3642 = vmatpush2.bf16.msra.mxu1 %v5026_v29  ;;  %3653 = vmatpush1.bf16.msra.mxu0 %v5029_v38  ;;  %v5079_v29 = vld [vmem:[%s6787_s5 + $0x70] sm:$0xff]   ;;  %v5084_v60 = vld [vmem:[%s6787_s5 + $0x20] sm:$0xff]  }
 0x23e   :  { %3684 = vmatprep.mubr.bf16.mxu0 %v4397_v14  ;;  %v3360_v55 = vpop.f32.mrf.mxu0  ;;  %3654 = vmatprep.subr.bf16.mxu0 %v5034_v50  ;;  %v5080_v38 = vld [vmem:[%s6787_s5 + $0x30] sm:$0xff]   ;;  %v5083_v50 = vld [vmem:[%s6787_s5 + $0x60] sm:$0xff]   ;;  %v5085_v14 = vld [vmem:[%s6787_s5 + $0x58] sm:$0xff]  }
 0x23f   :  { %v3361_v27 = vadd.f32 %v3360_v55, %v6465_v42  ;;  %v5038_v42 = vld [vmem:[%s6784_s3 + $0xa40] ss:$8 sps:$4 sm:$0xff]   ;;  %4398 = vmatprep.subr.bf16.mxu1 %v5077_v39 }
 0x240   :  { %v3362_v16 = vpop.f32.mrf.mxu0  ;;  %v3399_v17 = vpop.f32.mrf.mxu1  ;;  %3644 = vmatmul.mubr.bf16.vlgmr.msra.gmra.mxu1 %v4394_v34  ;;  %v5088_v34 = vld [vmem:[%s6787_s5 + $0x10] sm:$0xff]  }
 0x241   :  { %v6643_v10 = vadd.f32 %v3399_v17, %v3359_v58  ;;  %3655 = vmatpush1.bf16.msra.mxu0 %v5032_v33  ;;  %4399 = vmatpush3.bf16.msra.mxu1 %v5078_v35  ;;  %v5086_v58 = vld [vmem:[%s6787_s5 + $0x18] sm:$0xff]   ;;  %v5087_v33 = vld [vmem:[%s6787_s5 + $0x50] sm:$0xff]   ;;  %v5090_v17 = vld [vmem:[%s6787_s5 + $0x8] sm:$0xff]  }
 0x242   :  { %v3363_v32 = vpop.f32.mrf.mxu0  ;;  %v3401_v20 = vpop.f32.mrf.mxu1  ;;  %3656 = vmatprep.subr.bf16.mxu0 %v5037_v26  ;;  %4400 = vmatprep.subr.bf16.mxu1 %v5079_v29 }
 0x243   :  { %v3402_v23 = vadd.f32 %v3401_v20, %v3361_v27  ;;  %v5089_v27 = vld [vmem:[%s6787_s5 + $0x48] sm:$0xff]  }
 0x244   :  { %v3403_v43 = vpop.f32.mrf.mxu1 }
 0x245   :  { %3657 = vmatpush1.bf16.msra.mxu0 %v5035_v4  ;;  %4401 = vmatpush3.bf16.msra.mxu1 %v5080_v38 }
 0x246   :  { %v3404_v61 = vpop.f32.mrf.mxu1  ;;  %3658 = vmatprep.subr.bf16.mxu0 %v5040_v21  ;;  %4402 = vmatprep.subr.bf16.mxu1 %v5081_v36  ;;  %v5091_v21 = vld [vmem:[%s6787_s5 + $0x40] sm:$0xff]  }
 0x249   :  { %3659 = vmatpush1.bf16.msra.mxu0 %v5038_v42  ;;  %4403 = vmatpush3.bf16.msra.mxu1 %v5082_v13  ;;  %v5092_v42 = vld [vmem:[%s6787_s5] sm:$0xff]  }
 0x24a   :  { %3660 = vmatprep.subr.bf16.mxu0 %v5043_v45  ;;  %4404 = vmatprep.subr.bf16.mxu1 %v5083_v50 }
 0x24d   :  { %3661 = vmatpush1.bf16.msra.mxu0 %v5041_v41  ;;  %4405 = vmatpush3.bf16.msra.mxu1 %v5084_v60 }
 0x24e   :  { %3662 = vmatprep.subr.bf16.mxu0 %v5046_v46  ;;  %4406 = vmatprep.subr.bf16.mxu1 %v5085_v14 }
 0x251   :  { %3663 = vmatpush1.bf16.msra.mxu0 %v5044_v1  ;;  %4407 = vmatpush3.bf16.msra.mxu1 %v5086_v58 }
 0x252   :  { %3664 = vmatprep.subr.bf16.mxu0 %v5049_v8  ;;  %4408 = vmatprep.subr.bf16.mxu1 %v5087_v33 }
 0x255   :  { %3665 = vmatpush1.bf16.msra.mxu0 %v5047_v22  ;;  %4409 = vmatpush3.bf16.msra.mxu1 %v5088_v34 }
 0x256   :  { %3666 = vmatprep.subr.bf16.mxu0 %v5052_v18  ;;  %4410 = vmatprep.subr.bf16.mxu1 %v5089_v27 }
 0x259   :  { %3667 = vmatpush1.bf16.msra.mxu0 %v5050_v63  ;;  %4411 = vmatpush3.bf16.msra.mxu1 %v5090_v17 }
 0x25a   :  { %3668 = vmatprep.subr.bf16.mxu0 %v5055_v0  ;;  %4412 = vmatprep.subr.bf16.mxu1 %v5091_v21 }
 0x25d   :  { %3669 = vmatpush2.bf16.msra.mxu0 %v5053_v28  ;;  %4413 = vmatpush3.bf16.msra.mxu1 %v5092_v42 }
 0x25e   :  { %3670 = vmatprep.subr.bf16.mxu0 %v5058_v40 }
 0x261   :  { %3671 = vmatpush2.bf16.msra.mxu0 %v5056_v24 }
 0x262   :  { %3672 = vmatprep.subr.bf16.mxu0 %v5061_v48 }
 0x265   :  { %3673 = vmatpush2.bf16.msra.mxu0 %v5059_v49 }
 0x266   :  { %3674 = vmatprep.subr.bf16.mxu0 %v5064_v37 }
 0x269   :  { %3675 = vmatpush2.bf16.msra.mxu0 %v5062_v2 }
 0x26a   :  { %3676 = vmatprep.subr.bf16.mxu0 %v5067_v30 }
 0x26d   :  { %3677 = vmatpush2.bf16.msra.mxu0 %v5065_v3 }
 0x26e   :  { %3678 = vmatprep.subr.bf16.mxu0 %v5070_v56 }
 0x271   :  { %3679 = vmatpush2.bf16.msra.mxu0 %v5068_v53 }
 0x272   :  { %3680 = vmatprep.subr.bf16.mxu0 %v5073_v47 }
 0x275   :  { %3681 = vmatpush2.bf16.msra.mxu0 %v5071_v51 }
 0x276   :  { %3682 = vmatprep.subr.bf16.mxu0 %v5076_v5 }
 0x279   :  { %3683 = vmatpush2.bf16.msra.mxu0 %v5074_v52 }
 0x27c   :  { %v3440_v31 = vpop.f32.mrf.mxu0  ;;  %3685 = vmatmul.mubr.bf16.vlgmr.msra.gmra.mxu0 %v4396_v7  ;;  %v4348_v7 = vld [vmem:[%s6788_s6] ss:$0 sm:$0xff] }
 0x27d   :  { %v3441_v44 = vadd.f32 %v3440_v31, %v6643_v10 }
 0x27e   :  { %v3442_v57 = vpop.f32.mrf.mxu0 }
 0x27f   :  { %v3443_v59 = vadd.f32 %v3442_v57, %v3402_v23 }
 0x280   :  { %v3444_v12 = vpop.f32.mrf.mxu0  ;;  %v3481_v19 = vpop.f32.mrf.mxu1 }
 0x281   :  { %v3482_v54 = vadd.f32 %v3481_v19, %v3441_v44 }
 0x282   :  { %v3445_v15 = vpop.f32.mrf.mxu0  ;;  %v3483_v9 = vpop.f32.mrf.mxu1 }
 0x283   :  { %v3484_v25 = vadd.f32 %v3483_v9, %v3443_v59 }
 0x284   :  { %v3485_v62 = vpop.f32.mrf.mxu1 }
 0x286   :  { %v3486_v11 = vpop.f32.mrf.mxu1 }
 0x2bc   :  { %v3522_v55 = vpop.f32.mrf.mxu0 }
 0x2bd   :  { %v3523_v26 = vadd.f32 %v3522_v55, %v3482_v54 }
 0x2be   :  { %v3524_v16 = vpop.f32.mrf.mxu0 }
 0x2bf   :  { %v3525_v10 = vadd.f32 %v3524_v16, %v3484_v25 }
 0x2c0   :  { %v3526_v4 = vpop.f32.mrf.mxu0  ;;  %v3563_v32 = vpop.f32.mrf.mxu1 }
 0x2c1   :  { %v3564_v20 = vadd.f32 %v3563_v32, %v3523_v26 }
 0x2c2   :  { %v3527_v23 = vpop.f32.mrf.mxu0  ;;  %v3565_v43 = vpop.f32.mrf.mxu1 }
 0x2c3   :  { %v3566_v61 = vadd.f32 %v3565_v43, %v3525_v10 }
 0x2c4   :  { %v3567_v45 = vpop.f32.mrf.mxu1 }
 0x2c6   :  { %v3568_v41 = vpop.f32.mrf.mxu1 }
 0x2fc   :  { %v3604_v46 = vpop.f32.mrf.mxu0 }
 0x2fd   :  { %v3605_v40 = vadd.f32 %v3604_v46, %v3564_v20 }
 0x2fe   :  { %v3606_v1 = vpop.f32.mrf.mxu0 }
 0x2ff   :  { %v3607_v24 = vadd.f32 %v3606_v1, %v3566_v61 }
 0x300   :  { %v3608_v8 = vpop.f32.mrf.mxu0  ;;  %v3645_v22 = vpop.f32.mrf.mxu1 }
 0x301   :  { %v3646_v48 = vadd.f32 %v3645_v22, %v3605_v40 }
 0x302   :  { %v3609_v18 = vpop.f32.mrf.mxu0  ;;  %v3647_v63 = vpop.f32.mrf.mxu1 }
 0x303   :  { %v3648_v37 = vadd.f32 %v3647_v63, %v3607_v24 }
 0x304   :  { %v3649_v0 = vpop.f32.mrf.mxu1 }
 0x306   :  { %v3650_v28 = vpop.f32.mrf.mxu1 }
 0x33c   :  { %v3686_v49 = vpop.f32.mrf.mxu0 }
 0x33d   :  { %v3687_v2 = vadd.f32 %v3686_v49, %v3646_v48 }
 0x33e   :  { %v3688_v30 = vpop.f32.mrf.mxu0 }
 0x33f   :  { %v3689_v3 = vadd.f32 %v3688_v30, %v3648_v37  ;;  %v3693_v56 = vmax.f32 %v3687_v2, 0.0 }
 0x340   :  { %v3690_v53 = vpop.f32.mrf.mxu0 }
 0x341   :  { %v3694_v47 = vmax.f32 %v3689_v3, 0.0  ;;  %v3695_v52 = vpack.c.bf16 %v3693_v56, %v3693_v56 }
 0x342   :  { %v3691_v51 = vpop.f32.mrf.mxu0 }
 0x343   :  { %v3696_v5 = vpack.c.bf16 %v3694_v47, %v3694_v47 }
 0x345   :  { %3864 = vmatprep.mubr.bf16.mxu1 %v3696_v5 }
 0x346   :  { %3865 = vmatmul.mubr.bf16.vlgmr.msra.gmra.mxu1 %v3695_v52 }
 0x406   :  { %v4414_v6 = vpop.f32.mrf.mxu1 }
 0x408   :  { %v4415_v31 = vpop.f32.mrf.mxu1 }
 0x409   :  { %v4416_v44 = vadd.f32 %v4415_v31, %v4414_v6 }
 0x40a   :  { %v4417_v57 = vpop.f32.mrf.mxu1 }
 0x40b   :  { %v3867_v59 = vadd.f32 %v4416_v44, %v4348_v7 }
 0x40c   :  { %v4418_v12 = vpop.f32.mrf.mxu1 }
 0x40d   :  { %3872 = vst [vmem:[%s6789_s7] sm:$0xff] %v3867_v59 }

</bundles_post_ra>
